<compile_context>
chip_gen: v7x
topology: tpu7x:2x2x1
jax: 0.10.0
libtpu: 0.0.40
codegen_flags: <defaults>
</compile_context>

<pallas_src>
import functools

import jax
import jax.numpy as jnp
from jax import lax
from jax.experimental import pallas as pl
from jax.experimental.pallas import tpu as pltpu


def _attention_block_kernel(x_ref, gamma_ref, beta_ref, pmat_ref,
                            wqkv_ref, bqkv_ref, wout_ref, bout_ref,
                            o_ref, qkv_scratch, pv_scratch,
                            *, num_heads, head_dim, channels, eps):
    f32 = jnp.float32
    bf16 = jnp.bfloat16
    C = channels
    d = head_dim

    x = x_ref[0]                                              # (C, HW) f32

    # ---------------- GroupNorm(8, C): statistics in f32 -------------------
    # Per-channel sum and sum-of-squares fused into one (C, 2) operand so the
    # block-diagonal group-averaging matmul is a single MXU push.  P already
    # contains the 1/(HW*Cg) factor.
    ch_stats = jnp.concatenate(
        [jnp.sum(x, axis=1, keepdims=True),
         jnp.sum(x * x, axis=1, keepdims=True)], axis=1)      # (C, 2)
    stats = jnp.dot(pmat_ref[...], ch_stats,
                    preferred_element_type=f32)               # (C, 2)
    mean_c = stats[:, 0:1]                                    # (C, 1)
    msq_c = stats[:, 1:2]                                     # (C, 1)
    # NOTE: single-pass E[x^2]-E[x]^2 in f32 -- fine for unit-scale test data;
    # switch to a two-pass centered variance if real activations drift.
    var_c = msq_c - mean_c * mean_c
    a = lax.rsqrt(var_c + eps) * gamma_ref[...]               # (C, 1) EUP rsqrt
    b = beta_ref[...] - mean_c * a                            # (C, 1)
    xn_bf = (x * a + b).astype(bf16)                          # single FMA + cast

    # ------------- fused qkv projection: one (3C, C) @ (C, HW) -------------
    # Attention scale already folded into the q rows of Wqkv / bqkv.
    qkv_scratch[...] = (
        jnp.dot(wqkv_ref[...], xn_bf, preferred_element_type=f32)
        + bqkv_ref[...])                                      # (3C, HW) f32

    # ---- per-head attention; fori_loop bounds live ranges to one head -----
    def head_body(h, carry):
        offq = pl.multiple_of(h * d, d)
        offk = pl.multiple_of(C + h * d, d)
        offv = pl.multiple_of(2 * C + h * d, d)
        qh = qkv_scratch[pl.ds(offq, d), :].astype(bf16)      # (d, HW)
        kh = qkv_scratch[pl.ds(offk, d), :].astype(bf16)      # (d, HW)
        vh = qkv_scratch[pl.ds(offv, d), :].astype(bf16)      # (d, HW)

        # s[i, j] = sum_d q[d, i] * k[d, j]
        s = lax.dot_general(qh, kh, (((0,), (0,)), ((), ())),
                            preferred_element_type=f32)       # (HW, HW) f32
        s = s - jnp.max(s, axis=-1, keepdims=True)
        p = jnp.exp(s)                                        # f32 (v5e: no bf16 EUP)
        p = p * pl.reciprocal(jnp.sum(p, axis=-1, keepdims=True), approx=True)

        # pv[d, i] = sum_j v[d, j] * p[i, j]
        pv = lax.dot_general(vh, p.astype(bf16), (((1,), (1,)), ((), ())),
                             preferred_element_type=f32)      # (d, HW)
        pv_scratch[pl.ds(offq, d), :] = pv                    # aligned store
        return carry

    lax.fori_loop(0, num_heads, head_body, 0)

    # ------ fused 1x1 output conv: one (C, C) @ (C, HW), full-depth K ------
    out = jnp.dot(wout_ref[...], pv_scratch[...].astype(bf16),
                  preferred_element_type=f32)                 # (C, HW)

    # ----------------------- bias + residual, store ------------------------
    o_ref[0] = x + out + bout_ref[...]


def _vmem_limit_bytes():
    """Per-generation scoped-VMEM budget (perf review opt: not hard-coded)."""
    mib = 1024 * 1024
    try:
        cap = pltpu.get_tpu_info().vmem_capacity_bytes
    except Exception:
        cap = 64 * mib          # conservative fallback (v7x per-TC size)
    # ~16 MiB headroom under physical capacity (v7x: 64 -> 48 MiB), clamped to
    # [32, 100] MiB (v5e/v6e's 128 MiB -> 100 MiB budget).
    return int(min(max(cap - 16 * mib, 32 * mib), 100 * mib))


def attention_block(x_nchw, params, *, num_heads=8, num_groups=8, eps=1e-5):
    """Pallas implementation of AttentionBlock.forward (input/output NCHW)."""
    B, C, H, W = x_nchw.shape
    HW = H * W
    d = C // num_heads
    cg = C // num_groups
    scale = float(d) ** -0.5

    f32 = jnp.float32
    bf16 = jnp.bfloat16

    # NCHW -> (B, C, HW): free reshape, no transpose / extra HBM pass.
    x_seq = x_nchw.reshape(B, C, HW).astype(f32)

    gamma = params["gamma"].reshape(C, 1).astype(f32)
    beta = params["beta"].reshape(C, 1).astype(f32)

    # Block-diagonal group-averaging matrix: P[c, c'] = 1/(HW*cg) iff same group.
    gid = jnp.arange(C) // cg
    pmat = (gid[:, None] == gid[None, :]).astype(f32) / float(HW * cg)

    # Fused 1x1 qkv conv weights kept as one (3C, C) matrix; attention scale
    # folded into the q rows / q bias.  Weights bf16 for the MXU, biases f32.
    w_qkv = params["w_qkv"].reshape(3 * C, C).astype(f32)
    b_qkv = params["b_qkv"].reshape(3 * C, 1).astype(f32)
    qkv_row_scale = jnp.concatenate(
        [jnp.full((C, 1), scale, f32), jnp.ones((2 * C, 1), f32)], axis=0)
    wqkv = (w_qkv * qkv_row_scale).astype(bf16)
    bqkv = b_qkv * qkv_row_scale

    # Fused 1x1 output conv weight kept as one (C, C) matrix.
    wout = params["w_out"].reshape(C, C).astype(bf16)
    bout = params["b_out"].reshape(C, 1).astype(f32)

    kernel = functools.partial(_attention_block_kernel,
                               num_heads=num_heads, head_dim=d,
                               channels=C, eps=eps)

    def invariant(shape):
        zeros = (0,) * len(shape)
        return pl.BlockSpec(shape, lambda b, _z=zeros: _z)
    # TODO(synk): at prod C, single-buffer these grid-invariant operands
    # (pipeline_mode=pl.Buffered(1)) to halve their VMEM footprint on v7x.

    out = pl.pallas_call(
        kernel,
        out_shape=jax.ShapeDtypeStruct((B, C, HW), f32),
        grid=(B,),
        in_specs=[
            pl.BlockSpec((1, C, HW), lambda b: (b, 0, 0)),    # x
            invariant((C, 1)),                                # gamma
            invariant((C, 1)),                                # beta
            invariant((C, C)),                                # group-average P
            invariant((3 * C, C)),                            # Wqkv (bf16, q scaled)
            invariant((3 * C, 1)),                            # bqkv (f32, q scaled)
            invariant((C, C)),                                # Wout (bf16)
            invariant((C, 1)),                                # bout (f32)
        ],
        out_specs=pl.BlockSpec((1, C, HW), lambda b: (b, 0, 0)),
        scratch_shapes=[
            pltpu.VMEM((3 * C, HW), f32),                     # fused qkv projection
            pltpu.VMEM((C, HW), f32),                         # per-head PV slab
        ],
        compiler_params=pltpu.CompilerParams(
            dimension_semantics=("parallel",),                # batch over TCs (v7x)
            vmem_limit_bytes=_vmem_limit_bytes(),
        ),
    )(x_seq, gamma, beta, pmat, wqkv, bqkv, wout, bout)

    # (B, C, HW) -> NCHW: free reshape.
    return out.reshape(B, C, H, W)


def attention_block_reference(x, params, *, num_heads=8, num_groups=8, eps=1e-5):
    """Pure-JAX replica of the PyTorch forward (NCHW), for verification."""
    B, C, H, W = x.shape
    cg = C // num_groups
    xg = x.reshape(B, num_groups, cg, H, W)
    mean = xg.mean(axis=(2, 3, 4), keepdims=True)
    var = xg.var(axis=(2, 3, 4), keepdims=True)
    xn = ((xg - mean) / jnp.sqrt(var + eps)).reshape(B, C, H, W)
    xn = xn * params["gamma"].reshape(1, C, 1, 1) + params["beta"].reshape(1, C, 1, 1)

    wq = params["w_qkv"].reshape(3 * C, C)
    qkv = jnp.einsum('oc,bchw->bohw', wq, xn) + params["b_qkv"].reshape(1, 3 * C, 1, 1)
    q, k, v = jnp.split(qkv, 3, axis=1)

    d = C // num_heads
    q = q.reshape(B, num_heads, d, H * W)
    k = k.reshape(B, num_heads, d, H * W)
    v = v.reshape(B, num_heads, d, H * W)
    attn = jnp.einsum('bhdi,bhdj->bhij', q, k) * (d ** -0.5)
    attn = jax.nn.softmax(attn, axis=-1)
    out = jnp.einsum('bhij,bhdj->bhdi', attn, v).reshape(B, C, H, W)

    wo = params["w_out"].reshape(C, C)
    out = jnp.einsum('oc,bchw->bohw', wo, out) + params["b_out"].reshape(1, C, 1, 1)
    return x + out


if __name__ == "__main__":
    # C=64 keeps head_dim=8 (a full f32 sublane tile, so per-head slices of the
    # fused qkv / pv slabs are aligned) and HW=256 keeps the output lane-dense.
    B, C, H, W = 2, 64, 16, 16
    num_heads = 8

    key = jax.random.PRNGKey(0)
    kx, k0, k1, k2, k3, k4, k5 = jax.random.split(key, 7)
    params = {
        "gamma": 1.0 + 0.1 * jax.random.normal(k0, (C,), jnp.float32),
        "beta": 0.1 * jax.random.normal(k1, (C,), jnp.float32),
        "w_qkv": 0.1 * jax.random.normal(k2, (3 * C, C, 1, 1), jnp.float32),
        "b_qkv": 0.1 * jax.random.normal(k3, (3 * C,), jnp.float32),
        "w_out": 0.1 * jax.random.normal(k4, (C, C, 1, 1), jnp.float32),
        "b_out": 0.1 * jax.random.normal(k5, (C,), jnp.float32),
    }
    x = jax.random.normal(kx, (B, C, H, W), jnp.float32)

    y = attention_block(x, params, num_heads=num_heads)
    y = jax.block_until_ready(y)

    y_ref = attention_block_reference(x, params, num_heads=num_heads)
    assert y.shape == (B, C, H, W)
    # bf16 MXU operands + approx softmax reciprocal give ~1e-2-level noise vs.
    # the pure-f32 reference; GroupNorm stats / softmax math itself is f32.
    err = jnp.max(jnp.abs(y - y_ref))
    assert jnp.allclose(y, y_ref, atol=2e-2, rtol=2e-2), f"max abs err {err}"

    print("KERNEL_OK")
</pallas_src>

<mosaic_0001>
module attributes {stable_mosaic.version = 11 : i64} {
  func.func @_attention_block_kernel(%arg0: i32, %arg1: memref<1x64x256xf32, #tpu.memory_space<vmem>>, %arg2: memref<64x1xf32, #tpu.memory_space<vmem>>, %arg3: memref<64x1xf32, #tpu.memory_space<vmem>>, %arg4: memref<64x64xf32, #tpu.memory_space<vmem>>, %arg5: memref<192x64xbf16, #tpu.memory_space<vmem>>, %arg6: memref<192x1xf32, #tpu.memory_space<vmem>>, %arg7: memref<64x64xbf16, #tpu.memory_space<vmem>>, %arg8: memref<64x1xf32, #tpu.memory_space<vmem>>, %arg9: memref<1x64x256xf32, #tpu.memory_space<vmem>>, %arg10: memref<192x256xf32, #tpu.memory_space<vmem>>, %arg11: memref<64x256xf32, #tpu.memory_space<vmem>>) attributes {dimension_semantics = [#tpu.dimension_semantics<parallel>], iteration_bounds = array<i64: 2>, scalar_prefetch = 0 : i64, scratch_operands = 2 : i64, tpu.core_type = #tpu.core_type<tc>, window_params = [{transform_indices = @transform_0, window_bounds = array<i64: 1, 64, 256>}, {pipeline_mode = #tpu.pipeline_mode<synchronous>, transform_indices = @transform_1, window_bounds = array<i64: 64, 1>}, {pipeline_mode = #tpu.pipeline_mode<synchronous>, transform_indices = @transform_2, window_bounds = array<i64: 64, 1>}, {pipeline_mode = #tpu.pipeline_mode<synchronous>, transform_indices = @transform_3, window_bounds = array<i64: 64, 64>}, {pipeline_mode = #tpu.pipeline_mode<synchronous>, transform_indices = @transform_4, window_bounds = array<i64: 192, 64>}, {pipeline_mode = #tpu.pipeline_mode<synchronous>, transform_indices = @transform_5, window_bounds = array<i64: 192, 1>}, {pipeline_mode = #tpu.pipeline_mode<synchronous>, transform_indices = @transform_6, window_bounds = array<i64: 64, 64>}, {pipeline_mode = #tpu.pipeline_mode<synchronous>, transform_indices = @transform_7, window_bounds = array<i64: 64, 1>}, {transform_indices = @transform_8, window_bounds = array<i64: 1, 64, 256>}]} {
    %c0 = arith.constant 0 : index
    %c0_0 = arith.constant 0 : index
    %c0_1 = arith.constant 0 : index
    %0 = vector.load %arg1[%c0, %c0_0, %c0_1] : memref<1x64x256xf32, #tpu.memory_space<vmem>>, vector<1x64x256xf32>
    %1 = vector.shape_cast %0 : vector<1x64x256xf32> to vector<64x256xf32>
    %cst = arith.constant dense<0.000000e+00> : vector<64xf32>
    %2 = vector.multi_reduction <add>, %1, %cst [1] : vector<64x256xf32> to vector<64xf32>
    %3 = vector.shape_cast %2 : vector<64xf32> to vector<64x1xf32>
    %4 = arith.mulf %1, %1 : vector<64x256xf32>
    %cst_2 = arith.constant dense<0.000000e+00> : vector<64xf32>
    %5 = vector.multi_reduction <add>, %4, %cst_2 [1] : vector<64x256xf32> to vector<64xf32>
    %6 = vector.shape_cast %5 : vector<64xf32> to vector<64x1xf32>
    %7 = tpu.concatenate %3, %6 in 1 : vector<64x1xf32>, vector<64x1xf32> -> vector<64x2xf32>
    %c0_3 = arith.constant 0 : index
    %c0_4 = arith.constant 0 : index
    %8 = vector.load %arg4[%c0_3, %c0_4] : memref<64x64xf32, #tpu.memory_space<vmem>>, vector<64x64xf32>
    %cst_5 = arith.constant dense<0.000000e+00> : vector<64x2xf32>
    %9 = tpu.matmul %8, %7, %cst_5 {dimension_numbers = #tpu.dot_dimension_numbers<[1], [0], [0], [1], [0, 0, 1, 1], [], []>} : vector<64x64xf32>, vector<64x2xf32>, vector<64x2xf32> -> vector<64x2xf32>
    %10 = vector.extract_strided_slice %9 {offsets = [0, 0], sizes = [64, 1], strides = [1, 1]} : vector<64x2xf32> to vector<64x1xf32>
    %11 = vector.extract_strided_slice %9 {offsets = [0, 1], sizes = [64, 1], strides = [1, 1]} : vector<64x2xf32> to vector<64x1xf32>
    %12 = arith.mulf %10, %10 : vector<64x1xf32>
    %13 = arith.subf %11, %12 : vector<64x1xf32>
    %cst_6 = arith.constant 9.99999974E-6 : f32
    %14 = vector.broadcast %cst_6 : f32 to vector<64x1xf32>
    %15 = arith.addf %13, %14 : vector<64x1xf32>
    %16 = math.rsqrt %15 : vector<64x1xf32>
    %c0_7 = arith.constant 0 : index
    %c0_8 = arith.constant 0 : index
    %17 = vector.load %arg2[%c0_7, %c0_8] : memref<64x1xf32, #tpu.memory_space<vmem>>, vector<64x1xf32>
    %18 = arith.mulf %16, %17 : vector<64x1xf32>
    %c0_9 = arith.constant 0 : index
    %c0_10 = arith.constant 0 : index
    %19 = vector.load %arg3[%c0_9, %c0_10] : memref<64x1xf32, #tpu.memory_space<vmem>>, vector<64x1xf32>
    %20 = arith.mulf %10, %18 : vector<64x1xf32>
    %21 = arith.subf %19, %20 : vector<64x1xf32>
    %22 = vector.broadcast %18 : vector<64x1xf32> to vector<64x256xf32>
    %23 = arith.mulf %1, %22 : vector<64x256xf32>
    %24 = vector.broadcast %21 : vector<64x1xf32> to vector<64x256xf32>
    %25 = arith.addf %23, %24 : vector<64x256xf32>
    %26 = arith.truncf %25 : vector<64x256xf32> to vector<64x256xbf16>
    %c0_11 = arith.constant 0 : index
    %c0_12 = arith.constant 0 : index
    %27 = vector.load %arg5[%c0_11, %c0_12] : memref<192x64xbf16, #tpu.memory_space<vmem>>, vector<192x64xbf16>
    %cst_13 = arith.constant dense<0.000000e+00> : vector<192x256xf32>
    %28 = tpu.matmul %27, %26, %cst_13 {dimension_numbers = #tpu.dot_dimension_numbers<[1], [0], [0], [1], [0, 0, 1, 1], [], []>} : vector<192x64xbf16>, vector<64x256xbf16>, vector<192x256xf32> -> vector<192x256xf32>
    %c0_14 = arith.constant 0 : index
    %c0_15 = arith.constant 0 : index
    %29 = vector.load %arg6[%c0_14, %c0_15] : memref<192x1xf32, #tpu.memory_space<vmem>>, vector<192x1xf32>
    %30 = vector.broadcast %29 : vector<192x1xf32> to vector<192x256xf32>
    %31 = arith.addf %28, %30 : vector<192x256xf32>
    %c0_16 = arith.constant 0 : index
    %c0_17 = arith.constant 0 : index
    %32 = vector.load %arg10[%c0_16, %c0_17] : memref<192x256xf32, #tpu.memory_space<vmem>>, vector<192x256xf32>
    tpu.vector_store %arg10[%c0_16, %c0_17], %31 {strides = array<i32>} : memref<192x256xf32, #tpu.memory_space<vmem>>, vector<192x256xf32>,
    %c0_i32 = arith.constant 0 : i32
    %c8_i32 = arith.constant 8 : i32
    %33 = arith.addi %c0_i32, %c8_i32 : i32
    %c1_i32 = arith.constant 1 : i32
    scf.for %arg12 = %c0_i32 to %33 step %c1_i32  : i32 {
      %c8_i32_29 = arith.constant 8 : i32
      %45 = arith.muli %arg12, %c8_i32_29 : i32
      %46 = tpu.assume_multiple %45, 8 : i32
      %c8_i32_30 = arith.constant 8 : i32
      %47 = arith.muli %arg12, %c8_i32_30 : i32
      %c64_i32 = arith.constant 64 : i32
      %48 = arith.addi %c64_i32, %47 : i32
      %49 = tpu.assume_multiple %48, 8 : i32
      %c8_i32_31 = arith.constant 8 : i32
      %50 = arith.muli %arg12, %c8_i32_31 : i32
      %c128_i32 = arith.constant 128 : i32
      %51 = arith.addi %c128_i32, %50 : i32
      %52 = tpu.assume_multiple %51, 8 : i32
      %53 = arith.index_cast %46 : i32 to index
      %c0_32 = arith.constant 0 : index
      %54 = vector.load %arg10[%53, %c0_32] : memref<192x256xf32, #tpu.memory_space<vmem>>, vector<8x256xf32>
      %55 = arith.truncf %54 : vector<8x256xf32> to vector<8x256xbf16>
      %56 = arith.index_cast %49 : i32 to index
      %c0_33 = arith.constant 0 : index
      %57 = vector.load %arg10[%56, %c0_33] : memref<192x256xf32, #tpu.memory_space<vmem>>, vector<8x256xf32>
      %58 = arith.truncf %57 : vector<8x256xf32> to vector<8x256xbf16>
      %59 = arith.index_cast %52 : i32 to index
      %c0_34 = arith.constant 0 : index
      %60 = vector.load %arg10[%59, %c0_34] : memref<192x256xf32, #tpu.memory_space<vmem>>, vector<8x256xf32>
      %61 = arith.truncf %60 : vector<8x256xf32> to vector<8x256xbf16>
      %cst_35 = arith.constant dense<0.000000e+00> : vector<256x256xf32>
      %62 = tpu.matmul %55, %58, %cst_35 {dimension_numbers = #tpu.dot_dimension_numbers<[0], [0], [1], [1], [0, 1, 1, 1], [], []>} : vector<8x256xbf16>, vector<8x256xbf16>, vector<256x256xf32> -> vector<256x256xf32>
      %cst_36 = arith.constant dense<0xFF800000> : vector<256xf32>
      %63 = vector.multi_reduction <maximumf>, %62, %cst_36 [1] : vector<256x256xf32> to vector<256xf32>
      %64 = vector.shape_cast %63 : vector<256xf32> to vector<256x1xf32>
      %65 = vector.broadcast %64 : vector<256x1xf32> to vector<256x256xf32>
      %66 = arith.subf %62, %65 : vector<256x256xf32>
      %67 = math.exp %66 : vector<256x256xf32>
      %cst_37 = arith.constant dense<0.000000e+00> : vector<256xf32>
      %68 = vector.multi_reduction <add>, %67, %cst_37 [1] : vector<256x256xf32> to vector<256xf32>
      %69 = vector.shape_cast %68 : vector<256xf32> to vector<256x1xf32>
      %70 = tpu.reciprocal %69 {approx = true} : vector<256x1xf32> -> vector<256x1xf32>
      %71 = vector.broadcast %70 : vector<256x1xf32> to vector<256x256xf32>
      %72 = arith.mulf %67, %71 : vector<256x256xf32>
      %73 = arith.truncf %72 : vector<256x256xf32> to vector<256x256xbf16>
      %cst_38 = arith.constant dense<0.000000e+00> : vector<8x256xf32>
      %74 = tpu.matmul %61, %73, %cst_38 {dimension_numbers = #tpu.dot_dimension_numbers<[1], [1], [0], [0], [0, 0, 1, 0], [], []>} : vector<8x256xbf16>, vector<256x256xbf16>, vector<8x256xf32> -> vector<8x256xf32>
      %75 = arith.index_cast %46 : i32 to index
      %c0_39 = arith.constant 0 : index
      %76 = vector.load %arg11[%75, %c0_39] : memref<64x256xf32, #tpu.memory_space<vmem>>, vector<8x256xf32>
      tpu.vector_store %arg11[%75, %c0_39], %74 {strides = array<i32>} : memref<64x256xf32, #tpu.memory_space<vmem>>, vector<8x256xf32>,
    }
    %c8_i32_18 = arith.constant 8 : i32
    %c0_19 = arith.constant 0 : index
    %c0_20 = arith.constant 0 : index
    %34 = vector.load %arg7[%c0_19, %c0_20] : memref<64x64xbf16, #tpu.memory_space<vmem>>, vector<64x64xbf16>
    %c0_21 = arith.constant 0 : index
    %c0_22 = arith.constant 0 : index
    %35 = vector.load %arg11[%c0_21, %c0_22] : memref<64x256xf32, #tpu.memory_space<vmem>>, vector<64x256xf32>
    %36 = arith.truncf %35 : vector<64x256xf32> to vector<64x256xbf16>
    %cst_23 = arith.constant dense<0.000000e+00> : vector<64x256xf32>
    %37 = tpu.matmul %34, %36, %cst_23 {dimension_numbers = #tpu.dot_dimension_numbers<[1], [0], [0], [1], [0, 0, 1, 1], [], []>} : vector<64x64xbf16>, vector<64x256xbf16>, vector<64x256xf32> -> vector<64x256xf32>
    %38 = arith.addf %1, %37 : vector<64x256xf32>
    %c0_24 = arith.constant 0 : index
    %c0_25 = arith.constant 0 : index
    %39 = vector.load %arg8[%c0_24, %c0_25] : memref<64x1xf32, #tpu.memory_space<vmem>>, vector<64x1xf32>
    %40 = vector.broadcast %39 : vector<64x1xf32> to vector<64x256xf32>
    %41 = arith.addf %38, %40 : vector<64x256xf32>
    %c0_26 = arith.constant 0 : index
    %c0_27 = arith.constant 0 : index
    %c0_28 = arith.constant 0 : index
    %42 = vector.load %arg9[%c0_26, %c0_27, %c0_28] : memref<1x64x256xf32, #tpu.memory_space<vmem>>, vector<1x64x256xf32>
    %43 = vector.shape_cast %42 : vector<1x64x256xf32> to vector<64x256xf32>
    %44 = vector.shape_cast %41 : vector<64x256xf32> to vector<1x64x256xf32>
    tpu.vector_store %arg9[%c0_26, %c0_27, %c0_28], %44 {strides = array<i32>} : memref<1x64x256xf32, #tpu.memory_space<vmem>>, vector<1x64x256xf32>,
    return
  }
  func.func @transform_0(%arg0: i32) -> (i32, i32, i32) {
    %c0_i32 = arith.constant 0 : i32
    %c0_i32_0 = arith.constant 0 : i32
    %c0_i32_1 = arith.constant 0 : i32
    return %arg0, %c0_i32, %c0_i32_0 : i32, i32, i32
  }
  func.func @transform_1(%arg0: i32) -> (i32, i32) {
    %c0_i32 = arith.constant 0 : i32
    %c0_i32_0 = arith.constant 0 : i32
    %c0_i32_1 = arith.constant 0 : i32
    return %c0_i32, %c0_i32_0 : i32, i32
  }
  func.func @transform_2(%arg0: i32) -> (i32, i32) {
    %c0_i32 = arith.constant 0 : i32
    %c0_i32_0 = arith.constant 0 : i32
    %c0_i32_1 = arith.constant 0 : i32
    return %c0_i32, %c0_i32_0 : i32, i32
  }
  func.func @transform_3(%arg0: i32) -> (i32, i32) {
    %c0_i32 = arith.constant 0 : i32
    %c0_i32_0 = arith.constant 0 : i32
    %c0_i32_1 = arith.constant 0 : i32
    return %c0_i32, %c0_i32_0 : i32, i32
  }
  func.func @transform_4(%arg0: i32) -> (i32, i32) {
    %c0_i32 = arith.constant 0 : i32
    %c0_i32_0 = arith.constant 0 : i32
    %c0_i32_1 = arith.constant 0 : i32
    return %c0_i32, %c0_i32_0 : i32, i32
  }
  func.func @transform_5(%arg0: i32) -> (i32, i32) {
    %c0_i32 = arith.constant 0 : i32
    %c0_i32_0 = arith.constant 0 : i32
    %c0_i32_1 = arith.constant 0 : i32
    return %c0_i32, %c0_i32_0 : i32, i32
  }
  func.func @transform_6(%arg0: i32) -> (i32, i32) {
    %c0_i32 = arith.constant 0 : i32
    %c0_i32_0 = arith.constant 0 : i32
    %c0_i32_1 = arith.constant 0 : i32
    return %c0_i32, %c0_i32_0 : i32, i32
  }
  func.func @transform_7(%arg0: i32) -> (i32, i32) {
    %c0_i32 = arith.constant 0 : i32
    %c0_i32_0 = arith.constant 0 : i32
    %c0_i32_1 = arith.constant 0 : i32
    return %c0_i32, %c0_i32_0 : i32, i32
  }
  func.func @transform_8(%arg0: i32) -> (i32, i32, i32) {
    %c0_i32 = arith.constant 0 : i32
    %c0_i32_0 = arith.constant 0 : i32
    %c0_i32_1 = arith.constant 0 : i32
    return %arg0, %c0_i32, %c0_i32_0 : i32, i32, i32
  }
}

</mosaic_0001>

<bundles_post_ra>
// kernel: tpu_custom_call.1
= control target key start
LH: loop header
LB: loop body
LE: loop exit
PB: predicated region body
PF: predicated region fallthrough
CT: control target
= control target key end

     0   :  { %13 = vsyncpa [#allocation5], 0  ;;  %s4250_s0 = inlined_call_operand.vmem [shape: f32[2,64,256], index: 0, kind: input, shape index: {}]   ;;  %s4251_s1 = inlined_call_operand.vmem [shape: f32[64,1], index: 1, kind: input, shape index: {}]   ;;  %s4252_s2 = inlined_call_operand.vmem [shape: f32[64,1], index: 2, kind: input, shape index: {}]   ;;  %s4253_s3 = inlined_call_operand.vmem [shape: f32[64,64], index: 3, kind: input, shape index: {}]   ;;  %s4254_s4 = inlined_call_operand.vmem [shape: bf16[192,64], index: 4, kind: input, shape index: {}]   ;;  %s4255_s5 = inlined_call_operand.vmem [shape: f32[192,1], index: 5, kind: input, shape index: {}]   ;;  %s4256_s6 = inlined_call_operand.vmem [shape: bf16[64,64], index: 6, kind: input, shape index: {}]   ;;  %s4257_s7 = inlined_call_operand.vmem [shape: f32[64,1], index: 7, kind: input, shape index: {}]   ;;  %s4258_s8 = inlined_call_operand.hbm [shape: f32[2,64,256], index: 8, kind: output, shape index: {}]  }
   0x1   :  { %15 = vsyncpa [#allocation5 + $0x1], 0  ;;  %s3041_s27 = smov 0   ;;  %s3043_s28 = smov 0  }
   0x2   :  { %s3045_s29 = smov 0   ;;  %s3047_s30 = smov 0  }
   0x3 LB: > { %s3062_s9 = sadd.s32 4294967295, %s2982_s30   ;;  %s2473_s10 = sadd.s32 4294967294, %s2982_s30   ;;  %s2982_s30 = sphi %s3047_s30, %s4404_s30   ;;  %s2978_s29 = sphi %s3045_s29, %s4403_s29   ;;  %s2974_s28 = sphi %s3043_s28, %s4402_s28   ;;  %s2970_s27 = sphi %s3041_s27, %s4401_s27  }
   0x4   : > { %s3066_s11 = sadd.s32 1, %s2982_s30   ;;  %s201_s12 = sadd.s32 1, %s2978_s29 }
   0x5   : > { %s198_s13 = ssub.s32 %s2982_s30, %s3066_s11  ;;  %p211_p0 = scmp.ne.s32.totalorder %s2978_s29, %s2974_s28 }
   0x6   : > { %p199_p1 = scmp.eq.s32.totalorder %s198_s13, 0  ;;  %p212_p2 = scmp.eq.s32.totalorder %s3062_s9, 1 }
   0x7   : > { %p217_p3 = scmp.ne.s32.totalorder %s2974_s28, %s2970_s27  ;;  %p218_p4 = scmp.eq.s32.totalorder %s2473_s10, 1 }
   0x8   : > { %s3077_s14 = scalar_select %p199_p1, %s2978_s29, %s201_s12  }
   0x9   : > { %p3079_p5 = por %p212_p2, %p211_p0  ;;  %p3083_p6 = por %p218_p4, %p217_p3 }
   0xa   : > { %p2476_p7 = scmp.ge.s32.totalorder %s2982_s30, 1  ;;  %p265_p8 = scmp.lt.s32.totalorder %s2982_s30, 3 }
   0xc   : > { %p266_p9 = pnand %p2476_p7, %p265_p8 }
   0xe   : > { %269 = sbr.rel (%p266_p9) target bundleno = 2418 (0x972), region = 52 }
  0x15   : > { %p299_p10 = scmp.lt.s32.totalorder %s3062_s9, 1  ;;  %s296_s22 = sand.u32 1, %s2974_s28   ;;  %v394_v48 = vld [vmem:[%s4253_s3] sm:$0xff]  ;;  %vm402_vm0 = vcmask 523264   ;;  %vm385_vm1 = vcmask 7168  }
  0x16   : > { %s3195_s23 = sshll.u32 %s296_s22, 7  ;;  %2588 = vmatprep.mubr.msk.f32.mxu0 %vm402_vm0, %v394_v48  ;;  %s2988_s13 = smov 1  }
  0x17   : > { %s300_s17 = scalar_select %p299_p10, %s3062_s9, 1 }
  0x18   : > { %s3524_s25 = scalar_lea.vmem [#allocation4], %s3195_s23  ;;  %s3526_s26 = smov 0  }
  0x19   : > { %s2550_s18 = sshll.u32 %s300_s17, 7 }
  0x1a   : > { %s3094_s21 = scalar_lea.vmem %s4250_s0, %s2550_s18 }
  0x1b   : > { %v3097_v0 = vld [vmem:[%s3094_s21 + $0x30] sm:$0xff]  ;;  %v3100_v1 = vld [vmem:[%s3094_s21 + $0x38] sm:$0xff]  ;;  %v3103_v2 = vld [vmem:[%s3094_s21] sm:$0xff] }
  0x1c   : > { %4306 = vst [vmem:[#allocation7_spill] sm:$0xff] %v3097_v0  ;;  %4307 = vst [vmem:[#allocation8_spill] sm:$0xff] %v3100_v1  ;;  %v330_v3 = vadd.f32 %v3100_v1, %v3097_v0  ;;  %v3108_v4 = vld [vmem:[%s3094_s21 + $0x8] sm:$0xff]  ;;  %v345_v5 = vmul.f32 %v3103_v2, %v3103_v2  ;;  %v3113_v6 = vld [vmem:[%s3094_s21 + $0x10] sm:$0xff]  ;;  %v351_v17 = vmul.f32 %v3097_v0, %v3097_v0 }
  0x1d   : > { %4308 = vst [vmem:[#allocation9_spill] sm:$0xff] %v3103_v2  ;;  %4309 = vst [vmem:[#allocation10_spill] sm:$0xff] %v3108_v4  ;;  %v3116_v7 = vld [vmem:[%s3094_s21 + $0x18] sm:$0xff]  ;;  %v321_v8 = vadd.f32 %v3108_v4, %v3103_v2  ;;  %v346_v9 = vmul.f32 %v3108_v4, %v3108_v4  ;;  %v347_v10 = vmul.f32 %v3113_v6, %v3113_v6  ;;  %v3129_v14 = vld [vmem:[%s3094_s21 + $0x20] sm:$0xff] }
  0x1e   : > { %4310 = vst [vmem:[#allocation11_spill] sm:$0xff] %v3113_v6  ;;  %4311 = vst [vmem:[#allocation12_spill] sm:$0xff] %v3116_v7  ;;  %331 = vadd.xlane.f32.xlu1 %v330_v3  ;;  %v348_v11 = vmul.f32 %v3116_v7, %v3116_v7  ;;  %v324_v13 = vadd.f32 %v3116_v7, %v3113_v6  ;;  %v3132_v15 = vld [vmem:[%s3094_s21 + $0x28] sm:$0xff]  ;;  %v352_v18 = vmul.f32 %v3100_v1, %v3100_v1  ;;  %v3145_v24 = vld [vmem:[%s3094_s21 + $0x50] sm:$0xff] }
  0x1f   : > { %322 = vadd.xlane.f32.xlu0 %v321_v8  ;;  %v361_v12 = vadd.f32 %v346_v9, %v345_v5  ;;  %4312 = vst [vmem:[#allocation13_spill] sm:$0xff] %v3129_v14  ;;  %4313 = vst [vmem:[#allocation14_spill] sm:$0xff] %v3132_v15  ;;  %v327_v19 = vadd.f32 %v3132_v15, %v3129_v14  ;;  %v349_v20 = vmul.f32 %v3129_v14, %v3129_v14  ;;  %v3148_v25 = vld [vmem:[%s3094_s21 + $0x58] sm:$0xff]  ;;  %v3151_v26 = vld [vmem:[%s3094_s21 + $0x40] sm:$0xff] }
  0x20   : > { %v364_v16 = vadd.f32 %v348_v11, %v347_v10  ;;  %v350_v21 = vmul.f32 %v3132_v15, %v3132_v15  ;;  %v370_v22 = vadd.f32 %v352_v18, %v351_v17  ;;  %4314 = vst [vmem:[#allocation15_spill] sm:$0xff] %v3145_v24  ;;  %4315 = vst [vmem:[#allocation16_spill] sm:$0xff] %v3148_v25  ;;  %v3154_v27 = vld [vmem:[%s3094_s21 + $0x48] sm:$0xff]  ;;  %v3169_v36 = vld [vmem:[%s3094_s21 + $0x70] sm:$0xff] }
  0x21   : > { %4316 = vst [vmem:[#allocation17_spill] sm:$0xff] %v3151_v26  ;;  %4317 = vst [vmem:[#allocation18_spill] sm:$0xff] %v3154_v27  ;;  %v336_v28 = vadd.f32 %v3148_v25, %v3145_v24  ;;  %v355_v29 = vmul.f32 %v3145_v24, %v3145_v24  ;;  %v356_v30 = vmul.f32 %v3148_v25, %v3148_v25  ;;  %v3172_v37 = vld [vmem:[%s3094_s21 + $0x78] sm:$0xff]  ;;  %v3175_v38 = vld [vmem:[%s3094_s21 + $0x60] sm:$0xff] }
  0x22   : > { %362 = vadd.xlane.f32.xlu1 %v361_v12  ;;  %v367_v23 = vadd.f32 %v350_v21, %v349_v20  ;;  %v333_v31 = vadd.f32 %v3154_v27, %v3151_v26  ;;  %v353_v32 = vmul.f32 %v3151_v26, %v3151_v26  ;;  %v354_v33 = vmul.f32 %v3154_v27, %v3154_v27  ;;  %v3178_v39 = vld [vmem:[%s3094_s21 + $0x68] sm:$0xff] }
  0x23   : > { %325 = vadd.xlane.f32.xlu0 %v324_v13  ;;  %v376_v34 = vadd.f32 %v356_v30, %v355_v29  ;;  %4318 = vst [vmem:[#allocation19_spill] sm:$0xff] %v3169_v36  ;;  %4319 = vst [vmem:[#allocation20_spill] sm:$0xff] %v3172_v37  ;;  %v342_v40 = vadd.f32 %v3172_v37, %v3169_v36  ;;  %v359_v41 = vmul.f32 %v3169_v36, %v3169_v36  ;;  %v395_v21 = vld [vmem:[%s4253_s3 + $0x8] sm:$0xff]  ;;  %v400_v30 = vld [vmem:[%s4253_s3 + $0x30] sm:$0xff] }
  0x24   : > { %v373_v35 = vadd.f32 %v354_v33, %v353_v32  ;;  %4320 = vst [vmem:[#allocation21_spill] sm:$0xff] %v3175_v38  ;;  %4321 = vst [vmem:[#allocation22_spill] sm:$0xff] %v3178_v39  ;;  %v360_v42 = vmul.f32 %v3172_v37, %v3172_v37  ;;  %v339_v43 = vadd.f32 %v3178_v39, %v3175_v38  ;;  %v399_v29 = vld [vmem:[%s4253_s3 + $0x28] sm:$0xff] }
  0x25   : > { %v357_v44 = vmul.f32 %v3175_v38, %v3175_v38  ;;  %v358_v45 = vmul.f32 %v3178_v39, %v3178_v39 }
  0x26   : > { %365 = vadd.xlane.f32.xlu1 %v364_v16  ;;  %v382_v46 = vadd.f32 %v360_v42, %v359_v41 }
  0x27   : > { %328 = vadd.xlane.f32.xlu0 %v327_v19  ;;  %v379_v47 = vadd.f32 %v358_v45, %v357_v44 }
  0x2a   : > { %371 = vadd.xlane.f32.xlu1 %v370_v22  ;;  %v396_v22 = vld [vmem:[%s4253_s3 + $0x10] sm:$0xff] }
  0x2b   : > { %368 = vadd.xlane.f32.xlu0 %v367_v23  ;;  %v397_v23 = vld [vmem:[%s4253_s3 + $0x18] sm:$0xff] }
  0x2e   : > { %337 = vadd.xlane.f32.xlu1 %v336_v28  ;;  %v398_v28 = vld [vmem:[%s4253_s3 + $0x20] sm:$0xff] }
  0x2f   : > { %334 = vadd.xlane.f32.xlu0 %v333_v31  ;;  %v401_v31 = vld [vmem:[%s4253_s3 + $0x38] sm:$0xff] }
  0x32   : > { %377 = vadd.xlane.f32.xlu1 %v376_v34 }
  0x33   : > { %374 = vadd.xlane.f32.xlu0 %v373_v35 }
  0x36   : > { %343 = vadd.xlane.f32.xlu1 %v342_v40 }
  0x37   : > { %340 = vadd.xlane.f32.xlu0 %v339_v43 }
  0x3a   : > { %383 = vadd.xlane.f32.xlu1 %v382_v46 }
  0x3b   : > { %380 = vadd.xlane.f32.xlu0 %v379_v47 }
  0xab   : > { %v332_v49 = vpop.xlane.xlu1 %331 }
  0xac   : > { %v323_v50 = vpop.xlane.xlu0 %322 }
  0xaf   : > { %v363_v51 = vpop.xlane.xlu1 %362 }
  0xb0   : > { %v326_v52 = vpop.xlane.xlu0 %325  ;;  %v386_v54 = vsel %vm385_vm1, %v323_v50, %v363_v51 }
  0xb3   : > { %v366_v53 = vpop.xlane.xlu1 %365 }
  0xb4   : > { %v387_v55 = vsel %vm385_vm1, %v326_v52, %v366_v53  ;;  %v329_v56 = vpop.xlane.xlu0 %328  ;;  %v596_v52 = vld [vmem:[%s4251_s1] sm:$0xff]  ;;  %v597_v53 = vld [vmem:[%s4251_s1 + $0x8] sm:$0xff] }
  0xb5   : > { %v2600_v57 = vpack.c.bf16 %v387_v55, %v386_v54  ;;  %v598_v54 = vld [vmem:[%s4251_s1 + $0x10] sm:$0xff]  ;;  %v599_v55 = vld [vmem:[%s4251_s1 + $0x18] sm:$0xff] }
  0xb7   : > { %v372_v58 = vpop.xlane.xlu1 %371  ;;  %2601 = vmatprep.subr.bf16.mxu0 %v2600_v57 }
  0xb8   : > { %v389_v59 = vsel %vm385_vm1, %v332_v49, %v372_v58  ;;  %v369_v60 = vpop.xlane.xlu0 %368  ;;  %2603 = vmatpush3.bf16.msra.mxu0 %v2600_v57  ;;  %v2989_v57 = vmov 1   ;;  %v601_v58 = vld [vmem:[%s4251_s1 + $0x28] sm:$0xff] }
  0xb9   : > { %v388_v61 = vsel %vm385_vm1, %v329_v56, %v369_v60  ;;  %v600_v56 = vld [vmem:[%s4251_s1 + $0x20] sm:$0xff]  ;;  %2686 = vset.pattern.permute.xlu0 %v2989_v57  ;;  %2687 = vset.pattern.permute.xlu1 %v2989_v57  ;;  %v603_v60 = vld [vmem:[%s4251_s1 + $0x38] sm:$0xff] }
  0xba   : > { %v2604_v62 = vpack.c.bf16 %v389_v59, %v388_v61  ;;  %v602_v59 = vld [vmem:[%s4251_s1 + $0x30] sm:$0xff] }
  0xbb   : > { %v338_v63 = vpop.xlane.xlu1 %337 }
  0xbc   : > { %2605 = vmatprep.subr.bf16.mxu0 %v2604_v62  ;;  %v335_v3 = vpop.xlane.xlu0 %334 }
  0xbd   : > { %2607 = vmatpush3.bf16.msra.mxu0 %v2604_v62 }
  0xbf   : > { %v378_v5 = vpop.xlane.xlu1 %377 }
  0xc0   : > { %v391_v8 = vsel %vm385_vm1, %v338_v63, %v378_v5  ;;  %v375_v9 = vpop.xlane.xlu0 %374 }
  0xc1   : > { %v390_v10 = vsel %vm385_vm1, %v335_v3, %v375_v9 }
  0xc2   : > { %v2608_v11 = vpack.c.bf16 %v391_v8, %v390_v10 }
  0xc3   : > { %v344_v12 = vpop.xlane.xlu1 %343 }
  0xc4   : > { %2609 = vmatprep.subr.bf16.mxu0 %v2608_v11  ;;  %v341_v13 = vpop.xlane.xlu0 %340 }
  0xc5   : > { %2611 = vmatpush3.bf16.msra.mxu0 %v2608_v11 }
  0xc7   : > { %v384_v16 = vpop.xlane.xlu1 %383 }
  0xc8   : > { %v393_v17 = vsel %vm385_vm1, %v344_v12, %v384_v16  ;;  %v381_v18 = vpop.xlane.xlu0 %380 }
  0xc9   : > { %v392_v19 = vsel %vm385_vm1, %v341_v13, %v381_v18  ;;  %v4259_v18 = vmov 0  }
  0xca   : > { %v2612_v20 = vpack.c.bf16 %v393_v17, %v392_v19  ;;  %1158 = vmatprep.mubr.bf16.mxu1 %v4259_v18 }
  0xcc   : > { %2613 = vmatprep.subr.bf16.mxu0 %v2612_v20 }
  0xcd   : > { %2615 = vmatpush3.bf16.msra.mxu0 %v2612_v20 }
  0xd0   : > { %2589 = vmatmul.mubr.msk.f32.vlgmr.msra.gmra.mrb[0].mxu0 %vm402_vm0, %v395_v21 }
  0xd1   : > { %2591 = vmatprep.mubr.msk.f32.mxu0 %vm402_vm0, %v396_v22 }
  0xd4   : > { %2592 = vmatmul.mubr.msk.f32.gmra.mrb[2].mxu0 %vm402_vm0, %v397_v23 }
  0xd5   : > { %2594 = vmatprep.mubr.msk.f32.mxu0 %vm402_vm0, %v398_v28 }
  0xd8   : > { %2595 = vmatmul.mubr.msk.f32.gmra.mrb[4].mxu0 %vm402_vm0, %v399_v29 }
  0xd9   : > { %2597 = vmatprep.mubr.msk.f32.mxu0 %vm402_vm0, %v400_v30 }
  0xdc   : > { %2598 = vmatmul.mubr.msk.f32.gmra.mrb[6].mxu0 %vm402_vm0, %v401_v31 }
  0xdd   : > { %1108 = vmatprep.mubr.bf16.mxu0 %v4259_v18 }
 0x1a3   : > { %v3237_v32 = vpop.f32.mrb[0].mxu0 }
 0x1a4   : > { %v533_v33 = vmul.f32 %v3237_v32, %v3237_v32  ;;  %v3241_v34 = vpop.f32.mrb[1].mxu0 }
 0x1a5   : > { %v532_v35 = vmul.f32 %v3241_v34, %v3241_v34 }
 0x1a6   : > { %550 = vrot.lane.b32.xlu1 %v533_v33, %s2988_s13 }
 0x1a7   : > { %548 = vrot.lane.b32.xlu0 %v532_v35, %s2988_s13  ;;  %v3247_v40 = vpop.f32.mrb[2].mxu0 }
 0x1a8   : > { %v535_v41 = vmul.f32 %v3247_v40, %v3247_v40  ;;  %v3251_v42 = vpop.f32.mrb[3].mxu0 }
 0x1a9   : > { %v534_v44 = vmul.f32 %v3251_v42, %v3251_v42 }
 0x1aa   : > { %554 = vrot.lane.b32.xlu1 %v535_v41, %s2988_s13 }
 0x1ab   : > { %v3254_v43 = vpop.f32.mrb[4].mxu0 }
 0x1ac   : > { %v3258_v45 = vpop.f32.mrb[5].mxu0  ;;  %v537_v47 = vmul.f32 %v3254_v43, %v3254_v43 }
 0x1ad   : > { %v536_v46 = vmul.f32 %v3258_v45, %v3258_v45 }
 0x1ae   : > { %552 = vrot.lane.b32.xlu1 %v534_v44, %s2988_s13 }
 0x1af   : > { %556 = vrot.lane.b32.xlu0 %v536_v46, %s2988_s13  ;;  %v3266_v48 = vpop.f32.mrb[6].mxu0 }
 0x1b0   : > { %v3268_v49 = vpop.f32.mrb[7].mxu0  ;;  %v539_v51 = vmul.f32 %v3266_v48, %v3266_v48 }
 0x1b1   : > { %v538_v50 = vmul.f32 %v3268_v49, %v3268_v49 }
 0x1b2   : > { %558 = vrot.lane.b32.xlu1 %v537_v47, %s2988_s13 }
 0x1b3   : > { %560 = vrot.lane.b32.xlu0 %v538_v50, %s2988_s13 }
 0x1b6   : > { %562 = vrot.lane.b32.xlu1 %v539_v51, %s2988_s13 }
 0x1b7   : > { %612 = vrot.lane.b32.xlu0 %v596_v52, %s2988_s13 }
 0x1ba   : > { %614 = vrot.lane.b32.xlu1 %v597_v53, %s2988_s13 }
 0x1bb   : > { %616 = vrot.lane.b32.xlu0 %v598_v54, %s2988_s13 }
 0x1be   : > { %618 = vrot.lane.b32.xlu1 %v599_v55, %s2988_s13 }
 0x1bf   : > { %620 = vrot.lane.b32.xlu0 %v600_v56, %s2988_s13 }
 0x1c2   : > { %622 = vrot.lane.b32.xlu1 %v601_v58, %s2988_s13 }
 0x1c3   : > { %624 = vrot.lane.b32.xlu0 %v602_v59, %s2988_s13 }
 0x1c6   : > { %626 = vrot.lane.b32.xlu1 %v603_v60, %s2988_s13  ;;  %s2991_s13 = smov 127  }
 0x218   : > { %v551_v61 = vpop.permute.xlu1 %550 }
 0x219   : > { %v549_v62 = vpop.permute.xlu0 %548  ;;  %v573_v63 = vsub.f32 %v3237_v32, %v551_v61 }
 0x21a   : > { %v572_v3 = vsub.f32 %v3241_v34, %v549_v62 }
 0x21b   : > { %v581_v9 = vadd.f32 1e-05, %v573_v63 }
 0x21c   : > { %v580_v5 = vadd.f32 1e-05, %v572_v3  ;;  %v555_v8 = vpop.permute.xlu1 %554 }
 0x21d   : > { %v575_v10 = vsub.f32 %v3247_v40, %v555_v8 }
 0x21e   : > { %2702 = vrsqrt.f32 %v580_v5 }
 0x21f   : > { %2704 = vrsqrt.f32 %v581_v9  ;;  %v583_v16 = vadd.f32 1e-05, %v575_v10 }
 0x220   : > { %v553_v11 = vpop.permute.xlu1 %552 }
 0x221   : > { %v574_v12 = vsub.f32 %v3251_v42, %v553_v11  ;;  %v557_v13 = vpop.permute.xlu0 %556 }
 0x222   : > { %v576_v17 = vsub.f32 %v3258_v45, %v557_v13 }
 0x223   : > { %v582_v19 = vadd.f32 1e-05, %v574_v12  ;;  %v644_v12 = vld [vmem:[%s4252_s2] sm:$0xff] }
 0x224   : > { %v584_v20 = vadd.f32 1e-05, %v576_v17  ;;  %v559_v21 = vpop.permute.xlu1 %558 }
 0x225   : > { %2706 = vrsqrt.f32 %v582_v19  ;;  %v577_v22 = vsub.f32 %v3254_v43, %v559_v21  ;;  %v561_v23 = vpop.permute.xlu0 %560  ;;  %v645_v19 = vld [vmem:[%s4252_s2 + $0x8] sm:$0xff] }
 0x226   : > { %2708 = vrsqrt.f32 %v583_v16  ;;  %v578_v28 = vsub.f32 %v3268_v49, %v561_v23  ;;  %v646_v23 = vld [vmem:[%s4252_s2 + $0x10] sm:$0xff] }
 0x227   : > { %2710 = vrsqrt.f32 %v584_v20  ;;  %v585_v29 = vadd.f32 1e-05, %v577_v22 }
 0x228   : > { %v2703_v30 = vpop.eup %2702  ;;  %v586_v31 = vadd.f32 1e-05, %v578_v28  ;;  %v563_v33 = vpop.permute.xlu1 %562 }
 0x229   : > { %2712 = vrsqrt.f32 %v585_v29  ;;  %v579_v35 = vsub.f32 %v3266_v48, %v563_v33  ;;  %v613_v41 = vpop.permute.xlu0 %612  ;;  %v2705_v47 = vpop.eup %2704 }
 0x22a   : > { %v636_v44 = vmul.f32 %v2703_v30, %v613_v41  ;;  %2714 = vrsqrt.f32 %v586_v31 }
 0x22b   : > { %v587_v46 = vadd.f32 1e-05, %v579_v35 }
 0x22c   : > { %v615_v50 = vpop.permute.xlu1 %614  ;;  %660 = vrot.lane.b32.xlu0 %v636_v44, %s2991_s13 }
 0x22d   : > { %2716 = vrsqrt.f32 %v587_v46  ;;  %v637_v51 = vmul.f32 %v2705_v47, %v615_v50  ;;  %v617_v52 = vpop.permute.xlu0 %616 }
 0x22f   : > { %v2707_v53 = vpop.eup %2706  ;;  %662 = vrot.lane.b32.xlu1 %v637_v51, %s2991_s13 }
 0x230   : > { %v2709_v54 = vpop.eup %2708  ;;  %v638_v55 = vmul.f32 %v2707_v53, %v617_v52  ;;  %v619_v56 = vpop.permute.xlu1 %618 }
 0x231   : > { %v2711_v57 = vpop.eup %2710  ;;  %v639_v58 = vmul.f32 %v2709_v54, %v619_v56  ;;  %v621_v59 = vpop.permute.xlu0 %620 }
 0x232   : > { %664 = vrot.lane.b32.xlu0 %v638_v55, %s2991_s13  ;;  %v640_v61 = vmul.f32 %v2711_v57, %v621_v59  ;;  %v837_v57 = vld [vmem:[%s4255_s5 + $0x8] sm:$0xff] }
 0x233   : > { %v2713_v60 = vpop.eup %2712  ;;  %666 = vrot.lane.b32.xlu1 %v639_v58, %s2991_s13  ;;  %v841_v59 = vld [vmem:[%s4255_s5 + $0x28] sm:$0xff] }
 0x234   : > { %v623_v62 = vpop.permute.xlu1 %622  ;;  %v2715_v63 = vpop.eup %2714 }
 0x235   : > { %v641_v3 = vmul.f32 %v2713_v60, %v623_v62  ;;  %v625_v5 = vpop.permute.xlu0 %624  ;;  %v840_v60 = vld [vmem:[%s4255_s5 + $0x20] sm:$0xff]  ;;  %v842_v62 = vld [vmem:[%s4255_s5 + $0x30] sm:$0xff] }
 0x236   : > { %668 = vrot.lane.b32.xlu0 %v640_v61, %s2991_s13  ;;  %v642_v9 = vmul.f32 %v2715_v63, %v625_v5  ;;  %v845_v63 = vld [vmem:[%s4255_s5 + $0x48] sm:$0xff]  ;;  %v847_v5 = vld [vmem:[%s4255_s5 + $0x58] sm:$0xff] }
 0x237   : > { %v2717_v8 = vpop.eup %2716  ;;  %670 = vrot.lane.b32.xlu1 %v641_v3, %s2991_s13 }
 0x238   : > { %v627_v10 = vpop.permute.xlu1 %626 }
 0x239   : > { %v643_v11 = vmul.f32 %v2717_v8, %v627_v10  ;;  %v846_v8 = vld [vmem:[%s4255_s5 + $0x50] sm:$0xff]  ;;  %v848_v10 = vld [vmem:[%s4255_s5 + $0x60] sm:$0xff] }
 0x23a   : > { %672 = vrot.lane.b32.xlu0 %v642_v9, %s2991_s13 }
 0x23b   : > { %674 = vrot.lane.b32.xlu1 %v643_v11, %s2991_s13 }
 0x23e   : > { %701 = vperm.xlu0 %2686, %v636_v44  }
 0x23f   : > { %705 = vperm.xlu1 %2687, %v637_v51   ;;  %v650_v51 = vld [vmem:[%s4252_s2 + $0x30] sm:$0xff] }
 0x242   : > { %717 = vperm.xlu0 %2686, %v640_v61   ;;  %v843_v61 = vld [vmem:[%s4255_s5 + $0x38] sm:$0xff] }
 0x243   : > { %709 = vperm.xlu1 %2687, %v638_v55  }
 0x246   : > { %2688 = vset.pattern.permute.xlu0 %v4259_v18 }
 0x247   : > { %713 = vperm.xlu1 %2687, %v639_v58   ;;  %v838_v58 = vld [vmem:[%s4255_s5 + $0x10] sm:$0xff] }
 0x24b   : > { %721 = vperm.xlu1 %2687, %v641_v3   ;;  %v844_v3 = vld [vmem:[%s4255_s5 + $0x40] sm:$0xff] }
 0x24f   : > { %729 = vperm.xlu1 %2687, %v643_v11   ;;  %v851_v11 = vld [vmem:[%s4255_s5 + $0x78] sm:$0xff] }
 0x253   : > { %725 = vperm.xlu1 %2687, %v642_v9   ;;  %v849_v9 = vld [vmem:[%s4255_s5 + $0x68] sm:$0xff] }
 0x257   : > { %2689 = vset.pattern.permute.xlu1 %v4259_v18 }
 0x29e   : > { %v661_v13 = vpop.permute.xlu0 %660 }
 0x29f   : > { %v684_v16 = vmul.f32 %v661_v13, %v3241_v34  ;;  %v647_v34 = vld [vmem:[%s4252_s2 + $0x18] sm:$0xff]  ;;  %v853_v13 = vld [vmem:[%s4255_s5 + $0x88] sm:$0xff] }
 0x2a1   : > { %v692_v17 = vsub.f32 %v644_v12, %v684_v16  ;;  %v663_v20 = vpop.permute.xlu1 %662  ;;  %v850_v12 = vld [vmem:[%s4255_s5 + $0x70] sm:$0xff]  ;;  %v852_v16 = vld [vmem:[%s4255_s5 + $0x80] sm:$0xff] }
 0x2a2   : > { %v685_v21 = vmul.f32 %v3237_v32, %v663_v20  ;;  %v648_v32 = vld [vmem:[%s4252_s2 + $0x20] sm:$0xff]  ;;  %v857_v20 = vld [vmem:[%s4255_s5 + $0xa8] sm:$0xff] }
 0x2a3   : > { %750 = vperm.xlu1 %2689, %v692_v17   ;;  %v855_v17 = vld [vmem:[%s4255_s5 + $0x98] sm:$0xff] }
 0x2a4   : > { %v693_v22 = vsub.f32 %v645_v19, %v685_v21  ;;  %v665_v28 = vpop.permute.xlu0 %664  ;;  %v854_v19 = vld [vmem:[%s4255_s5 + $0x90] sm:$0xff]  ;;  %v856_v21 = vld [vmem:[%s4255_s5 + $0xa0] sm:$0xff] }
 0x2a5   : > { %v686_v29 = vmul.f32 %v665_v28, %v3251_v42  ;;  %v667_v30 = vpop.permute.xlu1 %666  ;;  %v649_v42 = vld [vmem:[%s4252_s2 + $0x28] sm:$0xff] }
 0x2a6   : > { %v687_v31 = vmul.f32 %v3247_v40, %v667_v30  ;;  %755 = vperm.xlu0 %2688, %v693_v22   ;;  %v859_v22 = vld [vmem:[%s4255_s5 + $0xb8] sm:$0xff] }
 0x2a7   : > { %v694_v33 = vsub.f32 %v646_v23, %v686_v29  ;;  %v858_v23 = vld [vmem:[%s4255_s5 + $0xb0] sm:$0xff] }
 0x2a8   : > { %v695_v35 = vsub.f32 %v647_v34, %v687_v31  ;;  %v669_v41 = vpop.permute.xlu0 %668 }
 0x2a9   : > { %v688_v44 = vmul.f32 %v669_v41, %v3258_v45  ;;  %v671_v46 = vpop.permute.xlu1 %670  ;;  %v651_v45 = vld [vmem:[%s4252_s2 + $0x38] sm:$0xff] }
 0x2aa   : > { %v689_v47 = vmul.f32 %v3254_v43, %v671_v46  ;;  %765 = vperm.xlu1 %2689, %v695_v35   ;;  %760 = vperm.xlu0 %2688, %v694_v33  }
 0x2ab   : > { %v696_v40 = vsub.f32 %v648_v32, %v688_v44 }
 0x2ac   : > { %v697_v50 = vsub.f32 %v649_v42, %v689_v47  ;;  %v673_v52 = vpop.permute.xlu0 %672 }
 0x2ad   : > { %v690_v53 = vmul.f32 %v673_v52, %v3268_v49  ;;  %v675_v54 = vpop.permute.xlu1 %674  ;;  %v836_v49 = vld [vmem:[%s4255_s5] sm:$0xff] }
 0x2ae   : > { %v691_v55 = vmul.f32 %v3266_v48, %v675_v54  ;;  %775 = vperm.xlu0 %2688, %v697_v50   ;;  %770 = vperm.xlu1 %2689, %v696_v40   ;;  %v839_v48 = vld [vmem:[%s4255_s5 + $0x18] sm:$0xff] }
 0x2af   : > { %v698_v43 = vsub.f32 %v650_v51, %v690_v53 }
 0x2b0   : > { %v699_v56 = vsub.f32 %v651_v45, %v691_v55 }
 0x2b2   : > { %785 = vperm.xlu1 %2689, %v699_v56   ;;  %780 = vperm.xlu0 %2688, %v698_v43  }
 0x2b6   : > { %867 = vperm.xlu1 %2689, %v837_v57   ;;  %862 = vperm.xlu0 %2688, %v836_v49  }
 0x2ba   : > { %877 = vperm.xlu1 %2689, %v839_v48   ;;  %872 = vperm.xlu0 %2688, %v838_v58  }
 0x2bd   : > { %v702_v33 = vpop.permute.xlu0 %701 }
 0x2be   : > { %887 = vperm.xlu1 %2689, %v841_v59   ;;  %882 = vperm.xlu0 %2688, %v840_v60   ;;  %v706_v28 = vpop.permute.xlu1 %705  ;;  %v732_v44 = vmul.f32 %v702_v33, %v3103_v2  ;;  %v733_v42 = vmul.f32 %v702_v33, %v3108_v4 }
 0x2bf   : > { %v734_v46 = vmul.f32 %v706_v28, %v3113_v6  ;;  %v735_v47 = vmul.f32 %v706_v28, %v3116_v7 }
 0x2c1   : > { %v718_v32 = vpop.permute.xlu0 %717 }
 0x2c2   : > { %897 = vperm.xlu1 %2689, %v843_v61   ;;  %892 = vperm.xlu0 %2688, %v842_v62   ;;  %v710_v29 = vpop.permute.xlu1 %709  ;;  %v740_v62 = vmul.f32 %v718_v32, %v3151_v26 }
 0x2c3   : > { %v736_v45 = vmul.f32 %v710_v29, %v3129_v14  ;;  %v737_v54 = vmul.f32 %v710_v29, %v3132_v15 }
 0x2c6   : > { %907 = vperm.xlu1 %2689, %v845_v63   ;;  %902 = vperm.xlu0 %2688, %v844_v3   ;;  %v714_v34 = vpop.permute.xlu1 %713  ;;  %v741_v63 = vmul.f32 %v718_v32, %v3154_v27 }
 0x2c7   : > { %v738_v55 = vmul.f32 %v714_v34, %v3097_v0  ;;  %v739_v43 = vmul.f32 %v714_v34, %v3100_v1 }
 0x2ca   : > { %917 = vperm.xlu1 %2689, %v847_v5   ;;  %912 = vperm.xlu0 %2688, %v846_v8   ;;  %v722_v30 = vpop.permute.xlu1 %721 }
 0x2cb   : > { %v742_v3 = vmul.f32 %v722_v30, %v3145_v24  ;;  %v743_v5 = vmul.f32 %v722_v30, %v3148_v25 }
 0x2ce   : > { %927 = vperm.xlu1 %2689, %v849_v9   ;;  %922 = vperm.xlu0 %2688, %v848_v10   ;;  %v730_v31 = vpop.permute.xlu1 %729 }
 0x2d2   : > { %937 = vperm.xlu1 %2689, %v851_v11   ;;  %932 = vperm.xlu0 %2688, %v850_v12   ;;  %v726_v35 = vpop.permute.xlu1 %725 }
 0x2d6   : > { %947 = vperm.xlu1 %2689, %v853_v13   ;;  %942 = vperm.xlu0 %2688, %v852_v16  }
 0x2da   : > { %957 = vperm.xlu1 %2689, %v855_v17   ;;  %952 = vperm.xlu0 %2688, %v854_v19   ;;  %v746_v19 = vmul.f32 %v730_v31, %v3169_v36 }
 0x2de   : > { %967 = vperm.xlu1 %2689, %v857_v20   ;;  %962 = vperm.xlu0 %2688, %v856_v21   ;;  %v747_v20 = vmul.f32 %v730_v31, %v3172_v37  ;;  %v744_v21 = vmul.f32 %v726_v35, %v3175_v38 }
 0x2e2   : > { %977 = vperm.xlu1 %2689, %v859_v22   ;;  %972 = vperm.xlu0 %2688, %v858_v23   ;;  %v745_v22 = vmul.f32 %v726_v35, %v3178_v39  ;;  %v2690_v35 = vld [vmem:[%s4254_s4] sm:$0xff]  }
 0x322   : > { %v751_v41 = vpop.permute.xlu1 %750 }
 0x323   : > { %v788_v50 = vadd.f32 %v751_v41, %v732_v44  ;;  %v789_v51 = vadd.f32 %v751_v41, %v733_v42  ;;  %v2691_v42 = vld [vmem:[%s4254_s4 + $0x28] sm:$0xff]  }
 0x325   : > { %v756_v40 = vpop.permute.xlu0 %755 }
 0x326   : > { %v790_v52 = vadd.f32 %v756_v40, %v734_v46  ;;  %v791_v53 = vadd.f32 %v756_v40, %v735_v47  ;;  %v2692_v46 = vld [vmem:[%s4254_s4 + $0x8] sm:$0xff]   ;;  %v2693_v47 = vld [vmem:[%s4254_s4 + $0x30] sm:$0xff]  }
 0x327   : > { %v2694_v40 = vld [vmem:[%s4254_s4 + $0x10] sm:$0xff]  }
 0x328   : > { %v804_v56 = vpack.c.bf16 %v790_v52, %v788_v50  ;;  %v805_v57 = vpack.c.bf16 %v791_v53, %v789_v51  ;;  %v2695_v50 = vld [vmem:[%s4254_s4 + $0x38] sm:$0xff]   ;;  %v2697_v52 = vld [vmem:[%s4254_s4 + $0x40] sm:$0xff]  }
 0x329   : > { %v766_v49 = vpop.permute.xlu1 %765  ;;  %v761_v48 = vpop.permute.xlu0 %760  ;;  %v2696_v51 = vld [vmem:[%s4254_s4 + $0x18] sm:$0xff]   ;;  %v2698_v53 = vld [vmem:[%s4254_s4 + $0x20] sm:$0xff]  }
 0x32a   : > { %v794_v58 = vadd.f32 %v766_v49, %v738_v55  ;;  %v795_v59 = vadd.f32 %v766_v49, %v739_v43  ;;  %v792_v60 = vadd.f32 %v761_v48, %v736_v45  ;;  %v793_v61 = vadd.f32 %v761_v48, %v737_v54  ;;  %1076 = vmatprep.subr.bf16.mxu0 %v805_v57  ;;  %v2699_v45 = vld [vmem:[%s4254_s4 + $0x48] sm:$0xff]   ;;  %v2700_v54 = vld [vmem:[%s4254_s4 + $0x50] sm:$0xff]   ;;  %v2701_v55 = vld [vmem:[%s4254_s4 + $0x58] sm:$0xff]  }
 0x32b   : > { %2616 = vmatprep.subr.bf16.mxu1 %v805_v57  ;;  %1077 = vmatpush1.bf16.msra.mxu0 %v804_v56 }
 0x32c   : > { %v806_v8 = vpack.c.bf16 %v794_v58, %v792_v60  ;;  %v807_v9 = vpack.c.bf16 %v795_v59, %v793_v61  ;;  %2620 = vmatpush1.bf16.msra.mxu1 %v804_v56 }
 0x32d   : > { %v771_v10 = vpop.permute.xlu1 %770  ;;  %v776_v11 = vpop.permute.xlu0 %775 }
 0x32e   : > { %v796_v12 = vadd.f32 %v771_v10, %v740_v62  ;;  %v797_v13 = vadd.f32 %v771_v10, %v741_v63  ;;  %v798_v16 = vadd.f32 %v776_v11, %v742_v3  ;;  %v799_v17 = vadd.f32 %v776_v11, %v743_v5  ;;  %1078 = vmatprep.subr.bf16.mxu0 %v807_v9 }
 0x32f   : > { %2617 = vmatprep.subr.bf16.mxu1 %v807_v9  ;;  %1079 = vmatpush1.bf16.msra.mxu0 %v806_v8 }
 0x330   : > { %v808_v23 = vpack.c.bf16 %v798_v16, %v796_v12  ;;  %v809_v28 = vpack.c.bf16 %v799_v17, %v797_v13  ;;  %2621 = vmatpush1.bf16.msra.mxu1 %v806_v8 }
 0x331   : > { %v786_v29 = vpop.permute.xlu1 %785  ;;  %v781_v34 = vpop.permute.xlu0 %780 }
 0x332   : > { %v802_v30 = vadd.f32 %v786_v29, %v746_v19  ;;  %v803_v33 = vadd.f32 %v786_v29, %v747_v20  ;;  %v800_v32 = vadd.f32 %v781_v34, %v744_v21  ;;  %v801_v41 = vadd.f32 %v781_v34, %v745_v22  ;;  %1080 = vmatprep.subr.bf16.mxu0 %v809_v28 }
 0x333   : > { %2618 = vmatprep.subr.bf16.mxu1 %v809_v28  ;;  %1081 = vmatpush1.bf16.msra.mxu0 %v808_v23 }
 0x334   : > { %v810_v44 = vpack.c.bf16 %v802_v30, %v800_v32  ;;  %v811_v31 = vpack.c.bf16 %v803_v33, %v801_v41  ;;  %2622 = vmatpush1.bf16.msra.mxu1 %v808_v23 }
 0x335   : > { %v868_v43 = vpop.permute.xlu1 %867  ;;  %v863_v56 = vpop.permute.xlu0 %862 }
 0x336   : > { %1082 = vmatprep.subr.bf16.mxu0 %v811_v31  ;;  %2619 = vmatprep.subr.bf16.mxu1 %v811_v31 }
 0x337   : > { %1083 = vmatpush1.bf16.msra.mxu0 %v810_v44 }
 0x338   : > { %2623 = vmatpush1.bf16.msra.mxu1 %v810_v44 }
 0x339   : > { %v878_v57 = vpop.permute.xlu1 %877  ;;  %v873_v49 = vpop.permute.xlu0 %872 }
 0x33a   : > { %2500 = vmatmul.mubr.msk.bf16.vlgmr.msra.gmra.mrb[8].mxu0 %vm402_vm0, %v2690_v35 }
 0x33b   : > { %2505 = vmatmul.mubr.msk.bf16.vlgmr.msra.gmra.mrb[0].mxu1 %vm402_vm0, %v2691_v42  ;;  %1118 = vmatprep.mubr.bf16.mxu0 %v4259_v18 }
 0x33c   : > { %1168 = vmatprep.mubr.bf16.mxu1 %v4259_v18 }
 0x33d   : > { %v3499_v48 = vpop.permute.xlu1 %887  ;;  %v3501_v58 = vpop.permute.xlu0 %882 }
 0x341   : > { %v3503_v59 = vpop.permute.xlu1 %897  ;;  %v3505_v60 = vpop.permute.xlu0 %892 }
 0x342   : > { %2501 = vmatmul.mubr.msk.bf16.gmra.mrb[12].mxu0 %vm402_vm0, %v2692_v46 }
 0x343   : > { %2506 = vmatmul.mubr.msk.bf16.gmra.mrb[4].mxu1 %vm402_vm0, %v2693_v47  ;;  %1128 = vmatprep.mubr.bf16.mxu0 %v4259_v18 }
 0x344   : > { %1178 = vmatprep.mubr.bf16.mxu1 %v4259_v18 }
 0x345   : > { %v3507_v61 = vpop.permute.xlu1 %907  ;;  %v3509_v62 = vpop.permute.xlu0 %902 }
 0x349   : > { %v918_v63 = vpop.permute.xlu1 %917  ;;  %v913_v3 = vpop.permute.xlu0 %912 }
 0x34a   : > { %2502 = vmatmul.mubr.msk.bf16.gmra.mrb[16].mxu0 %vm402_vm0, %v2694_v40 }
 0x34b   : > { %2507 = vmatmul.mubr.msk.bf16.gmra.mrb[8].mxu1 %vm402_vm0, %v2695_v50  ;;  %1138 = vmatprep.mubr.bf16.mxu0 %v4259_v18 }
 0x34c   : > { %1188 = vmatprep.mubr.bf16.mxu1 %v4259_v18 }
 0x34d   : > { %v928_v34 = vpop.permute.xlu1 %927  ;;  %v923_v30 = vpop.permute.xlu0 %922 }
 0x352   : > { %2503 = vmatmul.mubr.msk.bf16.gmra.mrb[20].mxu0 %vm402_vm0, %v2696_v51 }
 0x353   : > { %2508 = vmatmul.mubr.msk.bf16.gmra.mrb[12].mxu1 %vm402_vm0, %v2697_v52  ;;  %1148 = vmatprep.mubr.bf16.mxu0 %v4259_v18 }
 0x354   : > { %1198 = vmatprep.mubr.bf16.mxu1 %v4259_v18 }
 0x35a   : > { %2504 = vmatmul.mubr.msk.bf16.gmra.mrb[24].mxu0 %vm402_vm0, %v2698_v53 }
 0x35b   : > { %2509 = vmatmul.mubr.msk.bf16.gmra.mrb[16].mxu1 %vm402_vm0, %v2699_v45 }
 0x35c   : > { %1208 = vmatprep.mubr.bf16.mxu1 %v4259_v18 }
 0x363   : > { %2510 = vmatmul.mubr.msk.bf16.gmra.mrb[20].mxu1 %vm402_vm0, %v2700_v54 }
 0x364   : > { %1218 = vmatprep.mubr.bf16.mxu1 %v4259_v18 }
 0x36b   : > { %2511 = vmatmul.mubr.msk.bf16.gmra.mrb[24].mxu1 %vm402_vm0, %v2701_v55  ;;  %v938_v55 = vpop.permute.xlu1 %937 }
 0x40d   : > { %v1110_v5 = vpop.f32.mrb[8].mxu0 }
 0x40e   : > { %v1111_v8 = vadd.f32 %v1110_v5, %v863_v56  ;;  %v1160_v9 = vpop.f32.mrb[0].mxu1  ;;  %v1112_v10 = vpop.f32.mrb[9].mxu0 }
 0x40f   : > { %v1161_v11 = vadd.f32 %v1160_v9, %v913_v3  ;;  %v1113_v12 = vadd.f32 %v1112_v10, %v863_v56  ;;  %v1162_v13 = vpop.f32.mrb[1].mxu1  ;;  %v1114_v16 = vpop.f32.mrb[10].mxu0 }
 0x410   : > { %1229 = vst [vmem:[#allocation2] sm:$0xff] %v1111_v8  ;;  %v1163_v17 = vadd.f32 %v1162_v13, %v913_v3  ;;  %v1115_v19 = vadd.f32 %v1114_v16, %v868_v43  ;;  %v1164_v20 = vpop.f32.mrb[2].mxu1  ;;  %v1116_v21 = vpop.f32.mrb[11].mxu0 }
 0x411   : > { %1249 = vst [vmem:[#allocation2 + $0xa0] sm:$0xff] %v1161_v11  ;;  %1230 = vst [vmem:[#allocation2 + $0x8] sm:$0xff] %v1113_v12  ;;  %v1165_v22 = vadd.f32 %v1164_v20, %v918_v63  ;;  %v1117_v23 = vadd.f32 %v1116_v21, %v868_v43  ;;  %v1166_v28 = vpop.f32.mrb[3].mxu1  ;;  %v933_v43 = vpop.permute.xlu0 %932 }
 0x412   : > { %1250 = vst [vmem:[#allocation2 + $0xa8] sm:$0xff] %v1163_v17  ;;  %1231 = vst [vmem:[#allocation2 + $0x10] sm:$0xff] %v1115_v19  ;;  %v1167_v29 = vadd.f32 %v1166_v28, %v918_v63 }
 0x413   : > { %1251 = vst [vmem:[#allocation2 + $0xb0] sm:$0xff] %v1165_v22  ;;  %1232 = vst [vmem:[#allocation2 + $0x18] sm:$0xff] %v1117_v23 }
 0x414   : > { %1252 = vst [vmem:[#allocation2 + $0xb8] sm:$0xff] %v1167_v29 }
 0x415   : > { %v1120_v33 = vpop.f32.mrb[12].mxu0  ;;  %v943_v21 = vpop.permute.xlu0 %942 }
 0x416   : > { %v1121_v32 = vadd.f32 %v1120_v33, %v873_v49  ;;  %v1170_v41 = vpop.f32.mrb[4].mxu1  ;;  %v1122_v44 = vpop.f32.mrb[13].mxu0 }
 0x417   : > { %v1171_v31 = vadd.f32 %v1170_v41, %v923_v30  ;;  %v1123_v35 = vadd.f32 %v1122_v44, %v873_v49  ;;  %v1172_v42 = vpop.f32.mrb[5].mxu1  ;;  %v1124_v46 = vpop.f32.mrb[14].mxu0 }
 0x418   : > { %1233 = vst [vmem:[#allocation2 + $0x20] sm:$0xff] %v1121_v32  ;;  %v1173_v47 = vadd.f32 %v1172_v42, %v923_v30  ;;  %v1125_v40 = vadd.f32 %v1124_v46, %v878_v57  ;;  %v1174_v50 = vpop.f32.mrb[6].mxu1  ;;  %v1126_v51 = vpop.f32.mrb[15].mxu0 }
 0x419   : > { %1253 = vst [vmem:[#allocation2 + $0xc0] sm:$0xff] %v1171_v31  ;;  %1234 = vst [vmem:[#allocation2 + $0x28] sm:$0xff] %v1123_v35  ;;  %v1175_v52 = vadd.f32 %v1174_v50, %v928_v34  ;;  %v1127_v53 = vadd.f32 %v1126_v51, %v878_v57  ;;  %v1176_v45 = vpop.f32.mrb[7].mxu1 }
 0x41a   : > { %1254 = vst [vmem:[#allocation2 + $0xc8] sm:$0xff] %v1173_v47  ;;  %1235 = vst [vmem:[#allocation2 + $0x30] sm:$0xff] %v1125_v40  ;;  %v1177_v54 = vadd.f32 %v1176_v45, %v928_v34  ;;  %v953_v40 = vpop.permute.xlu0 %952 }
 0x41b   : > { %1255 = vst [vmem:[#allocation2 + $0xd0] sm:$0xff] %v1175_v52  ;;  %1236 = vst [vmem:[#allocation2 + $0x38] sm:$0xff] %v1127_v53 }
 0x41c   : > { %1256 = vst [vmem:[#allocation2 + $0xd8] sm:$0xff] %v1177_v54 }
 0x41d   : > { %v1130_v56 = vpop.f32.mrb[16].mxu0 }
 0x41e   : > { %v1131_v49 = vadd.f32 %v1130_v56, %v3501_v58  ;;  %v1180_v63 = vpop.f32.mrb[8].mxu1  ;;  %v1132_v3 = vpop.f32.mrb[17].mxu0 }
 0x41f   : > { %v1181_v5 = vadd.f32 %v1180_v63, %v933_v43  ;;  %v1133_v8 = vadd.f32 %v1132_v3, %v3501_v58  ;;  %v1182_v9 = vpop.f32.mrb[9].mxu1  ;;  %v1134_v10 = vpop.f32.mrb[18].mxu0 }
 0x420   : > { %1237 = vst [vmem:[#allocation2 + $0x40] sm:$0xff] %v1131_v49  ;;  %v1183_v57 = vadd.f32 %v1182_v9, %v933_v43  ;;  %v1135_v11 = vadd.f32 %v1134_v10, %v3499_v48  ;;  %v1184_v12 = vpop.f32.mrb[10].mxu1  ;;  %v1136_v13 = vpop.f32.mrb[19].mxu0 }
 0x421   : > { %1257 = vst [vmem:[#allocation2 + $0xe0] sm:$0xff] %v1181_v5  ;;  %1238 = vst [vmem:[#allocation2 + $0x48] sm:$0xff] %v1133_v8  ;;  %v1185_v16 = vadd.f32 %v1184_v12, %v938_v55  ;;  %v1137_v17 = vadd.f32 %v1136_v13, %v3499_v48  ;;  %v1186_v19 = vpop.f32.mrb[11].mxu1  ;;  %v948_v58 = vpop.permute.xlu1 %947 }
 0x422   : > { %1258 = vst [vmem:[#allocation2 + $0xe8] sm:$0xff] %v1183_v57  ;;  %1239 = vst [vmem:[#allocation2 + $0x50] sm:$0xff] %v1135_v11  ;;  %v1187_v20 = vadd.f32 %v1186_v19, %v938_v55 }
 0x423   : > { %1259 = vst [vmem:[#allocation2 + $0xf0] sm:$0xff] %v1185_v16  ;;  %1240 = vst [vmem:[#allocation2 + $0x58] sm:$0xff] %v1137_v17 }
 0x424   : > { %1260 = vst [vmem:[#allocation2 + $0xf8] sm:$0xff] %v1187_v20 }
 0x425   : > { %v1140_v22 = vpop.f32.mrb[20].mxu0 }
 0x426   : > { %v1141_v23 = vadd.f32 %v1140_v22, %v3505_v60  ;;  %v1190_v28 = vpop.f32.mrb[12].mxu1  ;;  %v1142_v29 = vpop.f32.mrb[21].mxu0 }
 0x427   : > { %v1191_v34 = vadd.f32 %v1190_v28, %v943_v21  ;;  %v1143_v30 = vadd.f32 %v1142_v29, %v3505_v60  ;;  %v1192_v33 = vpop.f32.mrb[13].mxu1  ;;  %v1144_v32 = vpop.f32.mrb[22].mxu0 }
 0x428   : > { %1241 = vst [vmem:[#allocation2 + $0x60] sm:$0xff] %v1141_v23  ;;  %v1193_v48 = vadd.f32 %v1192_v33, %v943_v21  ;;  %v1145_v41 = vadd.f32 %v1144_v32, %v3503_v59  ;;  %v1194_v44 = vpop.f32.mrb[14].mxu1  ;;  %v1146_v31 = vpop.f32.mrb[23].mxu0 }
 0x429   : > { %1261 = vst [vmem:[#allocation2 + $0x100] sm:$0xff] %v1191_v34  ;;  %1242 = vst [vmem:[#allocation2 + $0x68] sm:$0xff] %v1143_v30  ;;  %v1195_v35 = vadd.f32 %v1194_v44, %v948_v58  ;;  %v1147_v42 = vadd.f32 %v1146_v31, %v3503_v59  ;;  %v1196_v46 = vpop.f32.mrb[15].mxu1  ;;  %v958_v60 = vpop.permute.xlu1 %957 }
 0x42a   : > { %1262 = vst [vmem:[#allocation2 + $0x108] sm:$0xff] %v1193_v48  ;;  %1243 = vst [vmem:[#allocation2 + $0x70] sm:$0xff] %v1145_v41  ;;  %v1197_v47 = vadd.f32 %v1196_v46, %v948_v58 }
 0x42b   : > { %1263 = vst [vmem:[#allocation2 + $0x110] sm:$0xff] %v1195_v35  ;;  %1244 = vst [vmem:[#allocation2 + $0x78] sm:$0xff] %v1147_v42 }
 0x42c   : > { %1264 = vst [vmem:[#allocation2 + $0x118] sm:$0xff] %v1197_v47 }
 0x42d   : > { %v1150_v50 = vpop.f32.mrb[24].mxu0  ;;  %v968_v12 = vpop.permute.xlu1 %967 }
 0x42e   : > { %v1151_v51 = vadd.f32 %v1150_v50, %v3509_v62  ;;  %v1200_v52 = vpop.f32.mrb[16].mxu1  ;;  %v1152_v53 = vpop.f32.mrb[25].mxu0 }
 0x42f   : > { %v1201_v45 = vadd.f32 %v1200_v52, %v953_v40  ;;  %v1153_v54 = vadd.f32 %v1152_v53, %v3509_v62  ;;  %v1202_v55 = vpop.f32.mrb[17].mxu1  ;;  %v1154_v43 = vpop.f32.mrb[26].mxu0 }
 0x430   : > { %1245 = vst [vmem:[#allocation2 + $0x80] sm:$0xff] %v1151_v51  ;;  %v1203_v59 = vadd.f32 %v1202_v55, %v953_v40  ;;  %v1155_v56 = vadd.f32 %v1154_v43, %v3507_v61  ;;  %v1204_v49 = vpop.f32.mrb[18].mxu1  ;;  %v1156_v63 = vpop.f32.mrb[27].mxu0 }
 0x431   : > { %1265 = vst [vmem:[#allocation2 + $0x120] sm:$0xff] %v1201_v45  ;;  %1246 = vst [vmem:[#allocation2 + $0x88] sm:$0xff] %v1153_v54  ;;  %v1205_v3 = vadd.f32 %v1204_v49, %v958_v60  ;;  %v1157_v5 = vadd.f32 %v1156_v63, %v3507_v61  ;;  %v1206_v8 = vpop.f32.mrb[19].mxu1  ;;  %v963_v62 = vpop.permute.xlu0 %962 }
 0x432   : > { %1266 = vst [vmem:[#allocation2 + $0x128] sm:$0xff] %v1203_v59  ;;  %1247 = vst [vmem:[#allocation2 + $0x90] sm:$0xff] %v1155_v56  ;;  %v1207_v9 = vadd.f32 %v1206_v8, %v958_v60  ;;  %v978_v23 = vpop.permute.xlu1 %977 }
 0x433   : > { %1267 = vst [vmem:[#allocation2 + $0x130] sm:$0xff] %v1205_v3  ;;  %1248 = vst [vmem:[#allocation2 + $0x98] sm:$0xff] %v1157_v5 }
 0x434   : > { %1268 = vst [vmem:[#allocation2 + $0x138] sm:$0xff] %v1207_v9 }
 0x435   : > { %v973_v61 = vpop.permute.xlu0 %972 }
 0x436   : > { %v1210_v10 = vpop.f32.mrb[20].mxu1 }
 0x437   : > { %v1211_v57 = vadd.f32 %v1210_v10, %v963_v62  ;;  %v1212_v11 = vpop.f32.mrb[21].mxu1 }
 0x438   : > { %v1213_v13 = vadd.f32 %v1212_v11, %v963_v62  ;;  %v1214_v16 = vpop.f32.mrb[22].mxu1 }
 0x439   : > { %1269 = vst [vmem:[#allocation2 + $0x140] sm:$0xff] %v1211_v57  ;;  %v1215_v17 = vadd.f32 %v1214_v16, %v968_v12  ;;  %v1216_v19 = vpop.f32.mrb[23].mxu1 }
 0x43a   : > { %1270 = vst [vmem:[#allocation2 + $0x148] sm:$0xff] %v1213_v13  ;;  %v1217_v20 = vadd.f32 %v1216_v19, %v968_v12 }
 0x43b   : > { %1271 = vst [vmem:[#allocation2 + $0x150] sm:$0xff] %v1215_v17 }
 0x43c   : > { %1272 = vst [vmem:[#allocation2 + $0x158] sm:$0xff] %v1217_v20 }
 0x43e   : > { %v1220_v58 = vpop.f32.mrb[24].mxu1 }
 0x43f   : > { %v1221_v21 = vadd.f32 %v1220_v58, %v973_v61  ;;  %v1222_v22 = vpop.f32.mrb[25].mxu1 }
 0x440   : > { %v1223_v28 = vadd.f32 %v1222_v22, %v973_v61  ;;  %v1224_v29 = vpop.f32.mrb[26].mxu1 }
 0x441   : > { %1273 = vst [vmem:[#allocation2 + $0x160] sm:$0xff] %v1221_v21  ;;  %v1225_v34 = vadd.f32 %v1224_v29, %v978_v23  ;;  %v1226_v30 = vpop.f32.mrb[27].mxu1 }
 0x442   : > { %1274 = vst [vmem:[#allocation2 + $0x168] sm:$0xff] %v1223_v28  ;;  %v1227_v33 = vadd.f32 %v1226_v30, %v978_v23 }
 0x443   : > { %1275 = vst [vmem:[#allocation2 + $0x170] sm:$0xff] %v1225_v34 }
 0x444   : > { %1276 = vst [vmem:[#allocation2 + $0x178] sm:$0xff] %v1227_v33 }
 0x445 LB: >> { %v2992_v32 = vmov 0   ;;  %s3533_s10 = sshll.u32 %s2986_s26, 3  ;;  %vm1394_vm2 = vcmask 1043456   ;;  %vm1345_vm3 = vcmask 64512   ;;  %s1282_s26 = sadd.s32 1, %s2986_s26   ;;  %s2986_s26 = sphi %s3526_s26, %s1282_s26  }
 0x446   : >> { %1433 = vmatprep.mubr.bf16.mxu0 %v2992_v32  ;;  %s1286_s12 = sshra.s32 %s3533_s10, 3  ;;  %s1284_s17 = sadd.s32 64, %s3533_s10 }
 0x447   : >> { %s3537_s18 = sshll.u32 %s1286_s12, 4  ;;  %s1295_s23 = sshra.s32 %s1284_s17, 3 }
 0x448   : >> { %s2552_s19 = sshll.u32 %s1295_s23, 4  ;;  %s1290_s20 = scalar_lea.vmem [#allocation2], %s3537_s18 }
 0x449   : >> { %s1299_s21 = scalar_lea.vmem [#allocation2], %s2552_s19  ;;  %s1285_s24 = sadd.s32 128, %s3533_s10 }
 0x44a   : >> { %s1304_s13 = sshra.s32 %s1285_s24, 3  ;;  %s2148_s10 = scalar_lea.vmem [#allocation3], %s3537_s18 }
 0x44b   : >> { %v1291_v48 = vld [vmem:[%s1290_s20] sm:$0xff]  ;;  %v1301_v44 = vld [vmem:[%s1299_s21 + $0x8] sm:$0xff]  ;;  %s2553_s12 = sshll.u32 %s1304_s13, 4  ;;  %p1279_p11 = scmp.ge.s32.totalorder %s1282_s26, 8  }
 0x44c   : >> { %v1293_v41 = vpack.c.bf16 %v1291_v48, %v1291_v48  ;;  %v1300_v31 = vld [vmem:[%s1299_s21] sm:$0xff]  ;;  %v1303_v35 = vpack.c.bf16 %v1301_v44, %v1301_v44  ;;  %v1292_v47 = vld [vmem:[%s1290_s20 + $0x8] sm:$0xff]  ;;  %s4080_s17 = scalar_lea.vmem [#allocation2], %s2553_s12  ;;  %s2555_s23 = sshll.u32 (%p1279_p11), %s3062_s9, 11 }
 0x44d   : >> { %v1302_v42 = vpack.c.bf16 %v1300_v31, %v1300_v31  ;;  %v1294_v60 = vpack.c.bf16 %v1292_v47, %v1292_v47  ;;  %s2398_s19 = sshll.u32 (%p1279_p11), %s3524_s25, 4  ;;  %s4196_s21 = scalar_lea.hbm (%p1279_p11), %s4258_s8, %s2555_s23  ;;  %s4198_s19 = int_to_ptr.vmem [resolvable:$true] %s2398_s19 }
 0x44e   : >> { %1313 = vxpose.xlu0.c.b16.start.end [1/1] (short) %v1293_v41, 128  ;;  %2519 = vmatprep.subr.msk.bf16.mxu0 %vm1394_vm2, %v1303_v35  ;;  %s4209_s24 = scalar_lea.sflag (%p1279_p11), [#allocation5], %s296_s22  ;;  %s2916_s13 = scalar_lea.vmem (%p1279_p11), %s4198_s19, 2048 }
 0x44f   : >> { %v1396_v46 = vsel %vm1394_vm2, %v1302_v42, 0  ;;  %p2917_p12 = scmp.ne.s32.totalorder (%p1279_p11), %s4198_s19, %s2916_s13  ;;  %s2993_s12 = smov (%p1279_p11), [#allocation4]  }
 0x450   : >> { %1402 = vmatpush1.bf16.msra.mxu0 %v1396_v46 }
 0x451   : > { %p2918_p13 = pnand (%p1279_p11), %p2917_p12, %p3079_p5 }
 0x453   : > { %p2919_p0 = pneg (%p1279_p11), %p2918_p13 }
 0x46b   : >> { %1329 = vxpose.xlu0.c.b16.start.end [1/1] (short) %v1294_v60, 128 }
 0x4b4   : >> { %v1321_v40 = vpop.trf.xlu0 }
 0x4b5   : >> { %2520 = vmatmul.mubr.msk.bf16.vlgmr.msra.gmra.mrb[0].mxu0 %vm1345_vm3, %v1321_v40 }
 0x4b6   : >> { %1443 = vmatprep.mubr.bf16.mxu0 %v2992_v32 }
 0x4b8   : >> { %v1322_v50 = vpop.trf.xlu0 }
 0x4bc   : >> { %v1323_v51 = vpop.trf.xlu0 }
 0x4bd   : >> { %2521 = vmatmul.mubr.msk.bf16.gmra.mrb[4].mxu0 %vm1345_vm3, %v1322_v50 }
 0x4be   : >> { %1453 = vmatprep.mubr.bf16.mxu0 %v2992_v32 }
 0x4c0   : >> { %v1324_v52 = vpop.trf.xlu0 }
 0x4c4   : >> { %v1325_v53 = vpop.trf.xlu0 }
 0x4c5   : >> { %2522 = vmatmul.mubr.msk.bf16.gmra.mrb[8].mxu0 %vm1345_vm3, %v1323_v51 }
 0x4c6   : >> { %1463 = vmatprep.mubr.bf16.mxu0 %v2992_v32 }
 0x4c8   : >> { %v1326_v45 = vpop.trf.xlu0 }
 0x4cc   : >> { %v1327_v54 = vpop.trf.xlu0 }
 0x4cd   : >> { %2523 = vmatmul.mubr.msk.bf16.gmra.mrb[12].mxu0 %vm1345_vm3, %v1324_v52 }
 0x4ce   : >> { %1473 = vmatprep.mubr.bf16.mxu0 %v2992_v32 }
 0x4d0   : >> { %v1328_v55 = vpop.trf.xlu0 }
 0x4d4   : >> { %v1337_v43 = vpop.trf.xlu0 }
 0x4d5   : >> { %2524 = vmatmul.mubr.msk.bf16.gmra.mrb[16].mxu0 %vm1345_vm3, %v1325_v53 }
 0x4d6   : >> { %1483 = vmatprep.mubr.bf16.mxu0 %v2992_v32 }
 0x4d8   : >> { %v1338_v59 = vpop.trf.xlu0 }
 0x4dc   : >> { %v1339_v56 = vpop.trf.xlu0 }
 0x4dd   : >> { %2525 = vmatmul.mubr.msk.bf16.gmra.mrb[20].mxu0 %vm1345_vm3, %v1326_v45 }
 0x4de   : >> { %1493 = vmatprep.mubr.bf16.mxu0 %v2992_v32 }
 0x4e0   : >> { %v1340_v49 = vpop.trf.xlu0 }
 0x4e4   : >> { %v1341_v63 = vpop.trf.xlu0 }
 0x4e5   : >> { %2526 = vmatmul.mubr.msk.bf16.gmra.mrb[24].mxu0 %vm1345_vm3, %v1327_v54 }
 0x4e6   : >> { %1503 = vmatprep.mubr.bf16.mxu0 %v2992_v32 }
 0x4e8   : >> { %v1342_v3 = vpop.trf.xlu0 }
 0x4ec   : >> { %v1343_v5 = vpop.trf.xlu0 }
 0x4ed   : >> { %2527 = vmatmul.mubr.msk.bf16.gmra.mrb[28].mxu0 %vm1345_vm3, %v1328_v55 }
 0x4ee   : >> { %1513 = vmatprep.mubr.bf16.mxu0 %v2992_v32 }
 0x4f0   : >> { %v1344_v8 = vpop.trf.xlu0 }
 0x4f5   : >> { %2528 = vmatmul.mubr.msk.bf16.gmra.mrb[32].mxu0 %vm1345_vm3, %v1337_v43 }
 0x4f6   : >> { %1523 = vmatprep.mubr.bf16.mxu0 %v2992_v32 }
 0x4fd   : >> { %2529 = vmatmul.mubr.msk.bf16.gmra.mrb[36].mxu0 %vm1345_vm3, %v1338_v59 }
 0x4fe   : >> { %1533 = vmatprep.mubr.bf16.mxu0 %v2992_v32 }
 0x505   : >> { %2530 = vmatmul.mubr.msk.bf16.gmra.mrb[40].mxu0 %vm1345_vm3, %v1339_v56 }
 0x506   : >> { %1543 = vmatprep.mubr.bf16.mxu0 %v2992_v32 }
 0x50d   : >> { %2531 = vmatmul.mubr.msk.bf16.gmra.mrb[44].mxu0 %vm1345_vm3, %v1340_v49 }
 0x50e   : >> { %1553 = vmatprep.mubr.bf16.mxu0 %v2992_v32 }
 0x515   : >> { %2532 = vmatmul.mubr.msk.bf16.gmra.mrb[48].mxu0 %vm1345_vm3, %v1341_v63 }
 0x516   : >> { %1563 = vmatprep.mubr.bf16.mxu0 %v2992_v32 }
 0x51d   : >> { %2533 = vmatmul.mubr.msk.bf16.gmra.mrb[52].mxu0 %vm1345_vm3, %v1342_v3 }
 0x51e   : >> { %1573 = vmatprep.mubr.bf16.mxu0 %v2992_v32 }
 0x525   : >> { %2534 = vmatmul.mubr.msk.bf16.gmra.mrb[56].mxu0 %vm1345_vm3, %v1343_v5 }
 0x526   : >> { %1583 = vmatprep.mubr.bf16.mxu0 %v2992_v32 }
 0x52d   : >> { %2535 = vmatmul.mubr.msk.bf16.gmra.mrb[60].mxu0 %vm1345_vm3, %v1344_v8 }
 0x588   : >> { %v3571_v9 = vpop.f32.mrb[0].mxu0 }
 0x589   : >> { %v3573_v62 = vpop.f32.mrb[1].mxu0 }
 0x58a   : >> { %v3575_v10 = vpop.f32.mrb[2].mxu0  ;;  %v1594_v57 = vmax.f32 %v3571_v9, %v3573_v62 }
 0x58b   : >> { %v3579_v11 = vpop.f32.mrb[3].mxu0 }
 0x58c   : >> { %1595 = vmax.xlane.f32.xlu1 %v1594_v57  ;;  %v1597_v12 = vmax.f32 %v3575_v10, %v3579_v11 }
 0x590   : >> { %1598 = vmax.xlane.f32.xlu1 %v1597_v12  ;;  %v3583_v13 = vpop.f32.mrb[4].mxu0 }
 0x591   : >> { %v3585_v16 = vpop.f32.mrb[5].mxu0 }
 0x592   : >> { %v3587_v17 = vpop.f32.mrb[6].mxu0  ;;  %v1600_v19 = vmax.f32 %v3583_v13, %v3585_v16 }
 0x593   : >> { %v3591_v20 = vpop.f32.mrb[7].mxu0 }
 0x594   : >> { %1601 = vmax.xlane.f32.xlu1 %v1600_v19  ;;  %v1603_v61 = vmax.f32 %v3587_v17, %v3591_v20 }
 0x598   : >> { %1604 = vmax.xlane.f32.xlu1 %v1603_v61  ;;  %v3595_v58 = vpop.f32.mrb[8].mxu0 }
 0x599   : >> { %v3597_v21 = vpop.f32.mrb[9].mxu0 }
 0x59a   : >> { %v3599_v22 = vpop.f32.mrb[10].mxu0  ;;  %v1606_v23 = vmax.f32 %v3595_v58, %v3597_v21 }
 0x59b   : >> { %v3603_v28 = vpop.f32.mrb[11].mxu0 }
 0x59c   : >> { %1607 = vmax.xlane.f32.xlu1 %v1606_v23  ;;  %v1609_v29 = vmax.f32 %v3599_v22, %v3603_v28 }
 0x5a0   : >> { %1610 = vmax.xlane.f32.xlu1 %v1609_v29  ;;  %v3607_v34 = vpop.f32.mrb[12].mxu0 }
 0x5a1   : >> { %v3609_v30 = vpop.f32.mrb[13].mxu0 }
 0x5a2   : >> { %v3611_v33 = vpop.f32.mrb[14].mxu0  ;;  %v1612_v32 = vmax.f32 %v3607_v34, %v3609_v30 }
 0x5a3   : >> { %v3615_v48 = vpop.f32.mrb[15].mxu0 }
 0x5a4   : >> { %1613 = vmax.xlane.f32.xlu1 %v1612_v32  ;;  %v1615_v41 = vmax.f32 %v3611_v33, %v3615_v48 }
 0x5a8   : >> { %1616 = vmax.xlane.f32.xlu1 %v1615_v41  ;;  %v3619_v44 = vpop.f32.mrb[16].mxu0 }
 0x5a9   : >> { %v3621_v31 = vpop.f32.mrb[17].mxu0 }
 0x5aa   : >> { %v3623_v35 = vpop.f32.mrb[18].mxu0  ;;  %v1618_v42 = vmax.f32 %v3619_v44, %v3621_v31 }
 0x5ab   : >> { %v3627_v46 = vpop.f32.mrb[19].mxu0 }
 0x5ac   : >> { %1619 = vmax.xlane.f32.xlu1 %v1618_v42  ;;  %v1621_v47 = vmax.f32 %v3623_v35, %v3627_v46 }
 0x5ae   : >> { %1622 = vmax.xlane.f32.xlu0 %v1621_v47 }
 0x5b0   : >> { %v3631_v60 = vpop.f32.mrb[20].mxu0 }
 0x5b1   : >> { %v3633_v40 = vpop.f32.mrb[21].mxu0 }
 0x5b2   : >> { %v1624_v50 = vmax.f32 %v3631_v60, %v3633_v40  ;;  %v3637_v51 = vpop.f32.mrb[22].mxu0 }
 0x5b3   : >> { %v3639_v52 = vpop.f32.mrb[23].mxu0 }
 0x5b4   : >> { %1625 = vmax.xlane.f32.xlu1 %v1624_v50  ;;  %v1627_v53 = vmax.f32 %v3637_v51, %v3639_v52 }
 0x5b8   : >> { %1628 = vmax.xlane.f32.xlu1 %v1627_v53  ;;  %v3643_v45 = vpop.f32.mrb[24].mxu0 }
 0x5b9   : >> { %v3645_v54 = vpop.f32.mrb[25].mxu0 }
 0x5ba   : >> { %v1630_v55 = vmax.f32 %v3643_v45, %v3645_v54  ;;  %v3649_v43 = vpop.f32.mrb[26].mxu0 }
 0x5bb   : >> { %v3651_v59 = vpop.f32.mrb[27].mxu0 }
 0x5bc   : >> { %1631 = vmax.xlane.f32.xlu1 %v1630_v55  ;;  %v1633_v56 = vmax.f32 %v3649_v43, %v3651_v59 }
 0x5c0   : >> { %1634 = vmax.xlane.f32.xlu1 %v1633_v56  ;;  %v3655_v49 = vpop.f32.mrb[28].mxu0 }
 0x5c1   : >> { %v3657_v63 = vpop.f32.mrb[29].mxu0 }
 0x5c2   : >> { %v1636_v3 = vmax.f32 %v3655_v49, %v3657_v63  ;;  %v3661_v5 = vpop.f32.mrb[30].mxu0 }
 0x5c3   : >> { %v3663_v8 = vpop.f32.mrb[31].mxu0 }
 0x5c4   : >> { %1637 = vmax.xlane.f32.xlu1 %v1636_v3  ;;  %v1639_v57 = vmax.f32 %v3661_v5, %v3663_v8 }
 0x5c8   : >> { %1640 = vmax.xlane.f32.xlu1 %v1639_v57  ;;  %v3667_v12 = vpop.f32.mrb[32].mxu0 }
 0x5c9   : >> { %v3669_v19 = vpop.f32.mrb[33].mxu0 }
 0x5ca   : >> { %v1642_v61 = vmax.f32 %v3667_v12, %v3669_v19  ;;  %v3673_v23 = vpop.f32.mrb[34].mxu0 }
 0x5cb   : >> { %v3675_v29 = vpop.f32.mrb[35].mxu0 }
 0x5cc   : >> { %4322 = vst [vmem:[#allocation23_spill] sm:$0xff] %v3675_v29  ;;  %1643 = vmax.xlane.f32.xlu1 %v1642_v61  ;;  %v1645_v32 = vmax.f32 %v3673_v23, %v3675_v29 }
 0x5d0   : >> { %1646 = vmax.xlane.f32.xlu1 %v1645_v32  ;;  %v3679_v41 = vpop.f32.mrb[36].mxu0 }
 0x5d1   : >> { %4323 = vst [vmem:[#allocation24_spill] sm:$0xff] %v3679_v41  ;;  %v3681_v42 = vpop.f32.mrb[37].mxu0 }
 0x5d2   : >> { %4324 = vst [vmem:[#allocation25_spill] sm:$0xff] %v3681_v42  ;;  %v1648_v47 = vmax.f32 %v3679_v41, %v3681_v42  ;;  %v3685_v50 = vpop.f32.mrb[38].mxu0 }
 0x5d3   : >> { %4325 = vst [vmem:[#allocation26_spill] sm:$0xff] %v3685_v50  ;;  %v3687_v53 = vpop.f32.mrb[39].mxu0 }
 0x5d4   : >> { %4326 = vst [vmem:[#allocation27_spill] sm:$0xff] %v3687_v53  ;;  %1649 = vmax.xlane.f32.xlu1 %v1648_v47  ;;  %v1651_v55 = vmax.f32 %v3685_v50, %v3687_v53 }
 0x5d8   : >> { %1652 = vmax.xlane.f32.xlu1 %v1651_v55  ;;  %v3691_v56 = vpop.f32.mrb[40].mxu0 }
 0x5d9   : >> { %4327 = vst [vmem:[#allocation28_spill] sm:$0xff] %v3691_v56  ;;  %v3693_v3 = vpop.f32.mrb[41].mxu0 }
 0x5da   : >> { %4328 = vst [vmem:[#allocation29_spill] sm:$0xff] %v3693_v3  ;;  %v3695_v57 = vpop.f32.mrb[42].mxu0  ;;  %v1654_v61 = vmax.f32 %v3691_v56, %v3693_v3 }
 0x5db   : >> { %4329 = vst [vmem:[#allocation30_spill] sm:$0xff] %v3695_v57  ;;  %v3699_v32 = vpop.f32.mrb[43].mxu0 }
 0x5dc   : >> { %4330 = vst [vmem:[#allocation31_spill] sm:$0xff] %v3699_v32  ;;  %1655 = vmax.xlane.f32.xlu0 %v1654_v61  ;;  %v1657_v18 = vmax.f32 %v3695_v57, %v3699_v32 }
 0x5de   : >> { %1658 = vmax.xlane.f32.xlu1 %v1657_v18 }
 0x5e0   : >> { %v3703_v47 = vpop.f32.mrb[44].mxu0 }
 0x5e1   : >> { %4331 = vst [vmem:[#allocation32_spill] sm:$0xff] %v3703_v47  ;;  %v3705_v37 = vpop.f32.mrb[45].mxu0 }
 0x5e2   : >> { %4332 = vst [vmem:[#allocation33_spill] sm:$0xff] %v3705_v37  ;;  %v3707_v55 = vpop.f32.mrb[46].mxu0  ;;  %v1660_v1 = vmax.f32 %v3703_v47, %v3705_v37 }
 0x5e3   : >> { %4333 = vst [vmem:[#allocation34_spill] sm:$0xff] %v3707_v55  ;;  %v3711_v36 = vpop.f32.mrb[47].mxu0 }
 0x5e4   : >> { %4334 = vst [vmem:[#allocation35_spill] sm:$0xff] %v3711_v36  ;;  %1661 = vmax.xlane.f32.xlu0 %v1660_v1  ;;  %v1663_v0 = vmax.f32 %v3707_v55, %v3711_v36 }
 0x5e6   : >> { %1664 = vmax.xlane.f32.xlu1 %v1663_v0 }
 0x5e8   : >> { %v3715_v61 = vpop.f32.mrb[48].mxu0 }
 0x5e9   : >> { %v3717_v39 = vpop.f32.mrb[49].mxu0 }
 0x5ea   : >> { %v3719_v18 = vpop.f32.mrb[50].mxu0 }
 0x5eb   : >> { %v3723_v38 = vpop.f32.mrb[51].mxu0 }
 0x5f0   : >> { %v3727_v25 = vpop.f32.mrb[52].mxu0 }
 0x5f1   : >> { %v3729_v1 = vpop.f32.mrb[53].mxu0 }
 0x5f2   : >> { %v3731_v7 = vpop.f32.mrb[54].mxu0 }
 0x5f3   : >> { %v3735_v24 = vpop.f32.mrb[55].mxu0 }
 0x5f8   : >> { %v3739_v15 = vpop.f32.mrb[56].mxu0 }
 0x5f9   : >> { %v3741_v27 = vpop.f32.mrb[57].mxu0 }
 0x5fa   : >> { %v3743_v4 = vpop.f32.mrb[58].mxu0 }
 0x5fb   : >> { %v3747_v26 = vpop.f32.mrb[59].mxu0 }
 0x600   : >> { %v3751_v0 = vpop.f32.mrb[60].mxu0 }
 0x601   : >> { %v3753_v36 = vpop.f32.mrb[61].mxu0 }
 0x602   : >> { %v3755_v55 = vpop.f32.mrb[62].mxu0 }
 0x603   : >> { %v3759_v37 = vpop.f32.mrb[63].mxu0 }
 0x619   : >> { %v1596_v14 = vpop.xlane.xlu1 %1595 }
 0x61a   : >> { %v1690_v32 = vsub.f32 %v3571_v9, %v1596_v14  ;;  %v1691_v57 = vsub.f32 %v3573_v62, %v1596_v14 }
 0x61c   : >> { %v1754_v2 = vmul.f32 1.442695, %v1690_v32  ;;  %v1756_v3 = vmul.f32 1.442695, %v1691_v57 }
 0x61d   : >> { %v1599_v56 = vpop.xlane.xlu1 %1598 }
 0x61e   : >> { %2718 = vpow2.f32 %v1754_v2  ;;  %v1692_v53 = vsub.f32 %v3575_v10, %v1599_v56  ;;  %v1693_v50 = vsub.f32 %v3579_v11, %v1599_v56 }
 0x61f   : >> { %2720 = vpow2.f32 %v1756_v3 }
 0x620   : >> { %v1758_v6 = vmul.f32 1.442695, %v1692_v53  ;;  %v1760_v42 = vmul.f32 1.442695, %v1693_v50 }
 0x621   : >> { %v1602_v41 = vpop.xlane.xlu1 %1601 }
 0x622   : >> { %2722 = vpow2.f32 %v1758_v6  ;;  %v1694_v47 = vsub.f32 %v3583_v13, %v1602_v41  ;;  %v1695_v29 = vsub.f32 %v3585_v16, %v1602_v41 }
 0x623   : >> { %2724 = vpow2.f32 %v1760_v42 }
 0x624   : >> { %v1762_v9 = vmul.f32 1.442695, %v1694_v47  ;;  %v1764_v14 = vmul.f32 1.442695, %v1695_v29 }
 0x625   : >> { %v1605_v62 = vpop.xlane.xlu1 %1604 }
 0x626   : >> { %2726 = vpow2.f32 %v1762_v9  ;;  %v1696_v2 = vsub.f32 %v3587_v17, %v1605_v62  ;;  %v1697_v10 = vsub.f32 %v3591_v20, %v1605_v62 }
 0x627   : >> { %2728 = vpow2.f32 %v1764_v14  ;;  %v4335_v14 = vmax.f32 %v3715_v61, %v3717_v39 }
 0x628   : >> { %v3771_v11 = vpop.eup %2718  ;;  %v1766_v53 = vmul.f32 1.442695, %v1696_v2  ;;  %v1768_v50 = vmul.f32 1.442695, %v1697_v10 }
 0x629   : >> { %v3773_v56 = vpop.eup %2720  ;;  %v1608_v6 = vpop.xlane.xlu1 %1607 }
 0x62a   : >> { %2730 = vpow2.f32 %v1766_v53  ;;  %v1698_v13 = vsub.f32 %v3595_v58, %v1608_v6  ;;  %v1699_v16 = vsub.f32 %v3597_v21, %v1608_v6  ;;  %v1882_v29 = vadd.f32 %v3773_v56, %v3771_v11 }
 0x62b   : >> { %2732 = vpow2.f32 %v1768_v50 }
 0x62c   : >> { %v3779_v17 = vpop.eup %2722  ;;  %v1770_v20 = vmul.f32 1.442695, %v1698_v13  ;;  %v1772_v41 = vmul.f32 1.442695, %v1699_v16  ;;  %1883 = vadd.xlane.f32.xlu0 %v1882_v29  ;;  %v4336_v13 = vmax.f32 %v3719_v18, %v3723_v38 }
 0x62d   : >> { %v3781_v42 = vpop.eup %2724  ;;  %v1611_v3 = vpop.xlane.xlu1 %1610 }
 0x62e   : >> { %2734 = vpow2.f32 %v1770_v20  ;;  %v1700_v57 = vsub.f32 %v3599_v22, %v1611_v3  ;;  %v1701_v32 = vsub.f32 %v3603_v28, %v1611_v3  ;;  %v1885_v58 = vadd.f32 %v3781_v42, %v3779_v17 }
 0x62f   : >> { %2736 = vpow2.f32 %v1772_v41 }
 0x630   : >> { %v3787_v21 = vpop.eup %2726  ;;  %v1774_v47 = vmul.f32 1.442695, %v1700_v57  ;;  %v1776_v9 = vmul.f32 1.442695, %v1701_v32  ;;  %1886 = vadd.xlane.f32.xlu1 %v1885_v58  ;;  %1667 = vmax.xlane.f32.xlu0 %v4335_v14  ;;  %v4337_v32 = vmax.f32 %v3727_v25, %v3729_v1 }
 0x631   : >> { %v3792_v62 = vpop.eup %2728  ;;  %v1614_v2 = vpop.xlane.xlu1 %1613 }
 0x632   : >> { %2738 = vpow2.f32 %v1774_v47  ;;  %v1702_v22 = vsub.f32 %v3607_v34, %v1614_v2  ;;  %v1703_v28 = vsub.f32 %v3609_v30, %v1614_v2  ;;  %v1888_v10 = vadd.f32 %v3792_v62, %v3787_v21 }
 0x633   : >> { %2740 = vpow2.f32 %v1776_v9 }
 0x634   : >> { %v3798_v53 = vpop.eup %2730  ;;  %v1778_v50 = vmul.f32 1.442695, %v1702_v22  ;;  %v1780_v6 = vmul.f32 1.442695, %v1703_v28  ;;  %1889 = vadd.xlane.f32.xlu0 %v1888_v10  ;;  %1670 = vmax.xlane.f32.xlu1 %v4336_v13 }
 0x635   : >> { %v3803_v16 = vpop.eup %2732  ;;  %v1617_v29 = vpop.xlane.xlu1 %1616 }
 0x636   : >> { %2742 = vpow2.f32 %v1778_v50  ;;  %v1704_v34 = vsub.f32 %v3611_v33, %v1617_v29  ;;  %v1705_v30 = vsub.f32 %v3615_v48, %v1617_v29  ;;  %v1891_v20 = vadd.f32 %v3803_v16, %v3798_v53 }
 0x637   : >> { %2744 = vpow2.f32 %v1780_v6  ;;  %v4338_v6 = vmax.f32 %v3731_v7, %v3735_v24 }
 0x638   : >> { %v3809_v41 = vpop.eup %2734  ;;  %v1782_v3 = vmul.f32 1.442695, %v1704_v34  ;;  %v1784_v57 = vmul.f32 1.442695, %v1705_v30  ;;  %1892 = vadd.xlane.f32.xlu1 %v1891_v20  ;;  %1673 = vmax.xlane.f32.xlu0 %v4337_v32 }
 0x639   : >> { %v3814_v58 = vpop.eup %2736  ;;  %v1620_v47 = vpop.xlane.xlu1 %1619 }
 0x63a   : >> { %2746 = vpow2.f32 %v1782_v3  ;;  %v1706_v33 = vsub.f32 %v3619_v44, %v1620_v47  ;;  %v1707_v48 = vsub.f32 %v3621_v31, %v1620_v47  ;;  %v1894_v9 = vadd.f32 %v3814_v58, %v3809_v41 }
 0x63b   : >> { %2748 = vpow2.f32 %v1784_v57  ;;  %v1623_v14 = vpop.xlane.xlu0 %1622 }
 0x63c   : >> { %v3820_v2 = vpop.eup %2738  ;;  %v1786_v22 = vmul.f32 1.442695, %v1706_v33  ;;  %v1788_v28 = vmul.f32 1.442695, %v1707_v48  ;;  %v1708_v10 = vsub.f32 %v3623_v35, %v1623_v14  ;;  %v1709_v50 = vsub.f32 %v3627_v46, %v1623_v14  ;;  %1895 = vadd.xlane.f32.xlu0 %v1894_v9  ;;  %1676 = vmax.xlane.f32.xlu1 %v4338_v6 }
 0x63d   : >> { %v3827_v44 = vpop.eup %2740  ;;  %v4339_v35 = vmax.f32 %v3739_v15, %v3741_v27  ;;  %v4340_v48 = vmax.f32 %v3743_v4, %v3747_v26  ;;  %v4341_v6 = vmax.f32 %v3751_v0, %v3753_v36 }
 0x63e   : >> { %2750 = vpow2.f32 %v1786_v22  ;;  %v1790_v31 = vmul.f32 1.442695, %v1708_v10  ;;  %v1792_v13 = vmul.f32 1.442695, %v1709_v50  ;;  %v1897_v29 = vadd.f32 %v3827_v44, %v3820_v2 }
 0x63f   : >> { %2752 = vpow2.f32 %v1788_v28 }
 0x640   : >> { %v3831_v34 = vpop.eup %2742  ;;  %2754 = vpow2.f32 %v1790_v31  ;;  %1898 = vadd.xlane.f32.xlu1 %v1897_v29  ;;  %1679 = vmax.xlane.f32.xlu0 %v4339_v35 }
 0x641   : >> { %v3836_v46 = vpop.eup %2744  ;;  %2756 = vpow2.f32 %v1792_v13  ;;  %v1626_v30 = vpop.xlane.xlu1 %1625 }
 0x642   : >> { %v1710_v20 = vsub.f32 %v3631_v60, %v1626_v30  ;;  %v1711_v3 = vsub.f32 %v3633_v40, %v1626_v30  ;;  %v1900_v57 = vadd.f32 %v3836_v46, %v3831_v34 }
 0x644   : >> { %v3842_v32 = vpop.eup %2746  ;;  %v1794_v47 = vmul.f32 1.442695, %v1710_v20  ;;  %v1796_v33 = vmul.f32 1.442695, %v1711_v3  ;;  %1901 = vadd.xlane.f32.xlu0 %v1900_v57  ;;  %1682 = vmax.xlane.f32.xlu1 %v4340_v48  ;;  %v4342_v57 = vmax.f32 %v3755_v55, %v3759_v37 }
 0x645   : >> { %v3847_v9 = vpop.eup %2748  ;;  %v1629_v14 = vpop.xlane.xlu1 %1628 }
 0x646   : >> { %2758 = vpow2.f32 %v1794_v47  ;;  %v1712_v60 = vsub.f32 %v3637_v51, %v1629_v14  ;;  %v1713_v40 = vsub.f32 %v3639_v52, %v1629_v14  ;;  %v1903_v22 = vadd.f32 %v3847_v9, %v3842_v32 }
 0x647   : >> { %2760 = vpow2.f32 %v1796_v33 }
 0x648   : >> { %v3853_v28 = vpop.eup %2750  ;;  %v1798_v10 = vmul.f32 1.442695, %v1712_v60  ;;  %v1800_v50 = vmul.f32 1.442695, %v1713_v40  ;;  %1904 = vadd.xlane.f32.xlu1 %v1903_v22  ;;  %1685 = vmax.xlane.f32.xlu0 %v4341_v6 }
 0x649   : >> { %v3858_v31 = vpop.eup %2752  ;;  %v1632_v13 = vpop.xlane.xlu1 %1631 }
 0x64a   : >> { %v3860_v29 = vpop.eup %2754  ;;  %2762 = vpow2.f32 %v1798_v10  ;;  %v1714_v51 = vsub.f32 %v3643_v45, %v1632_v13  ;;  %v1715_v52 = vsub.f32 %v3645_v54, %v1632_v13  ;;  %v1906_v35 = vadd.f32 %v3858_v31, %v3853_v28 }
 0x64b   : >> { %v3866_v30 = vpop.eup %2756  ;;  %2764 = vpow2.f32 %v1800_v50 }
 0x64c   : >> { %v1802_v20 = vmul.f32 1.442695, %v1714_v51  ;;  %v1804_v3 = vmul.f32 1.442695, %v1715_v52  ;;  %1907 = vadd.xlane.f32.xlu0 %v1906_v35  ;;  %1688 = vmax.xlane.f32.xlu1 %v4342_v57  ;;  %v1909_v54 = vadd.f32 %v3866_v30, %v3860_v29 }
 0x64d   : >> { %v1635_v47 = vpop.xlane.xlu1 %1634 }
 0x64e   : >> { %2766 = vpow2.f32 %v1802_v20  ;;  %v1716_v33 = vsub.f32 %v3649_v43, %v1635_v47  ;;  %v1717_v45 = vsub.f32 %v3651_v59, %v1635_v47 }
 0x64f   : >> { %2768 = vpow2.f32 %v1804_v3 }
 0x650   : >> { %v3875_v48 = vpop.eup %2758  ;;  %v1806_v14 = vmul.f32 1.442695, %v1716_v33  ;;  %v1808_v60 = vmul.f32 1.442695, %v1717_v45  ;;  %1910 = vadd.xlane.f32.xlu1 %v1909_v54 }
 0x651   : >> { %v3877_v40 = vpop.eup %2760  ;;  %v1638_v22 = vpop.xlane.xlu1 %1637 }
 0x652   : >> { %2770 = vpow2.f32 %v1806_v14  ;;  %v1718_v10 = vsub.f32 %v3655_v49, %v1638_v22  ;;  %v1719_v50 = vsub.f32 %v3657_v63, %v1638_v22  ;;  %v1912_v43 = vadd.f32 %v3877_v40, %v3875_v48 }
 0x653   : >> { %2772 = vpow2.f32 %v1808_v60 }
 0x654   : >> { %v3883_v59 = vpop.eup %2762  ;;  %v1810_v6 = vmul.f32 1.442695, %v1718_v10  ;;  %v1812_v13 = vmul.f32 1.442695, %v1719_v50  ;;  %1913 = vadd.xlane.f32.xlu0 %v1912_v43  ;;  %v4343_v43 = vld [vmem:[#allocation23_spill] sm:$0xff] }
 0x655   : >> { %v3885_v51 = vpop.eup %2764  ;;  %v1641_v52 = vpop.xlane.xlu1 %1640 }
 0x656   : >> { %2774 = vpow2.f32 %v1810_v6  ;;  %v1720_v35 = vsub.f32 %v3661_v5, %v1641_v52  ;;  %v1721_v20 = vsub.f32 %v3663_v8, %v1641_v52  ;;  %v1915_v49 = vadd.f32 %v3885_v51, %v3883_v59 }
 0x657   : >> { %2776 = vpow2.f32 %v1812_v13 }
 0x658   : >> { %v3891_v63 = vpop.eup %2766  ;;  %v1814_v3 = vmul.f32 1.442695, %v1720_v35  ;;  %v1816_v57 = vmul.f32 1.442695, %v1721_v20  ;;  %1916 = vadd.xlane.f32.xlu1 %v1915_v49  ;;  %v4345_v49 = vld [vmem:[#allocation24_spill] sm:$0xff] }
 0x659   : >> { %v3893_v47 = vpop.eup %2768  ;;  %v1644_v33 = vpop.xlane.xlu1 %1643 }
 0x65a   : >> { %2778 = vpow2.f32 %v1814_v3  ;;  %v1722_v45 = vsub.f32 %v3667_v12, %v1644_v33  ;;  %v1723_v54 = vsub.f32 %v3669_v19, %v1644_v33  ;;  %v1918_v5 = vadd.f32 %v3893_v47, %v3891_v63 }
 0x65b   : >> { %2780 = vpow2.f32 %v1816_v57  ;;  %v4346_v57 = vld [vmem:[#allocation25_spill] sm:$0xff] }
 0x65c   : >> { %v3899_v8 = vpop.eup %2770  ;;  %v1818_v14 = vmul.f32 1.442695, %v1722_v45  ;;  %v1820_v60 = vmul.f32 1.442695, %v1723_v54  ;;  %1919 = vadd.xlane.f32.xlu0 %v1918_v5 }
 0x65d   : >> { %v3901_v22 = vpop.eup %2772  ;;  %v1647_v10 = vpop.xlane.xlu1 %1646 }
 0x65e   : >> { %2782 = vpow2.f32 %v1818_v14  ;;  %v1724_v50 = vsub.f32 %v3673_v23, %v1647_v10  ;;  %v1725_v6 = vsub.f32 %v4343_v43, %v1647_v10  ;;  %v1921_v12 = vadd.f32 %v3901_v22, %v3899_v8  ;;  %v4349_v10 = vld [vmem:[#allocation26_spill] sm:$0xff]  ;;  %v4350_v43 = vld [vmem:[#allocation27_spill] sm:$0xff] }
 0x65f   : >> { %2784 = vpow2.f32 %v1820_v60 }
 0x660   : >> { %v3907_v19 = vpop.eup %2774  ;;  %v1822_v13 = vmul.f32 1.442695, %v1724_v50  ;;  %v1824_v52 = vmul.f32 1.442695, %v1725_v6  ;;  %1922 = vadd.xlane.f32.xlu1 %v1921_v12 }
 0x661   : >> { %4344 = vst [vmem:[#allocation23_spill] sm:$0xff] %v3907_v19  ;;  %v3909_v35 = vpop.eup %2776  ;;  %v1650_v20 = vpop.xlane.xlu1 %1649 }
 0x662   : >> { %2786 = vpow2.f32 %v1822_v13  ;;  %v1726_v3 = vsub.f32 %v4345_v49, %v1650_v20  ;;  %v1727_v33 = vsub.f32 %v4346_v57, %v1650_v20  ;;  %v1924_v23 = vadd.f32 %v3909_v35, %v3907_v19  ;;  %v4352_v57 = vld [vmem:[#allocation28_spill] sm:$0xff] }
 0x663   : >> { %2788 = vpow2.f32 %v1824_v52 }
 0x664   : >> { %v3915_v45 = vpop.eup %2778  ;;  %v1826_v54 = vmul.f32 1.442695, %v1726_v3  ;;  %v1828_v5 = vmul.f32 1.442695, %v1727_v33  ;;  %1925 = vadd.xlane.f32.xlu0 %v1924_v23  ;;  %v4353_v23 = vld [vmem:[#allocation29_spill] sm:$0xff] }
 0x665   : >> { %4347 = vst [vmem:[#allocation24_spill] sm:$0xff] %v3915_v45  ;;  %v3917_v14 = vpop.eup %2780  ;;  %v1653_v60 = vpop.xlane.xlu1 %1652 }
 0x666   : >> { %4348 = vst [vmem:[#allocation25_spill] sm:$0xff] %v3917_v14  ;;  %2790 = vpow2.f32 %v1826_v54  ;;  %v1728_v50 = vsub.f32 %v4349_v10, %v1653_v60  ;;  %v1729_v6 = vsub.f32 %v4350_v43, %v1653_v60  ;;  %v1927_v12 = vadd.f32 %v3917_v14, %v3915_v45 }
 0x667   : >> { %2792 = vpow2.f32 %v1828_v5 }
 0x668   : >> { %v3923_v13 = vpop.eup %2782  ;;  %v1830_v52 = vmul.f32 1.442695, %v1728_v50  ;;  %v1832_v20 = vmul.f32 1.442695, %v1729_v6  ;;  %1928 = vadd.xlane.f32.xlu1 %v1927_v12  ;;  %v4355_v50 = vld [vmem:[#allocation30_spill] sm:$0xff]  ;;  %v4356_v12 = vld [vmem:[#allocation31_spill] sm:$0xff] }
 0x669   : >> { %4351 = vst [vmem:[#allocation26_spill] sm:$0xff] %v3923_v13  ;;  %v3925_v49 = vpop.eup %2784  ;;  %v1656_v3 = vpop.xlane.xlu0 %1655 }
 0x66a   : >> { %2794 = vpow2.f32 %v1830_v52  ;;  %v1730_v33 = vsub.f32 %v4352_v57, %v1656_v3  ;;  %v1731_v54 = vsub.f32 %v4353_v23, %v1656_v3  ;;  %v1930_v60 = vadd.f32 %v3925_v49, %v3923_v13  ;;  %v4360_v13 = vld [vmem:[#allocation34_spill] sm:$0xff] }
 0x66b   : >> { %2796 = vpow2.f32 %v1832_v20  ;;  %v1659_v10 = vpop.xlane.xlu1 %1658 }
 0x66c   : >> { %v3931_v43 = vpop.eup %2786  ;;  %v1834_v5 = vmul.f32 1.442695, %v1730_v33  ;;  %v1836_v19 = vmul.f32 1.442695, %v1731_v54  ;;  %v1732_v6 = vsub.f32 %v4355_v50, %v1659_v10  ;;  %v1733_v45 = vsub.f32 %v4356_v12, %v1659_v10  ;;  %1931 = vadd.xlane.f32.xlu0 %v1930_v60  ;;  %v4358_v54 = vld [vmem:[#allocation32_spill] sm:$0xff]  ;;  %v4359_v60 = vld [vmem:[#allocation33_spill] sm:$0xff] }
 0x66d   : >> { %4354 = vst [vmem:[#allocation27_spill] sm:$0xff] %v3931_v43  ;;  %v3935_v14 = vpop.eup %2788 }
 0x66e   : >> { %4357 = vst [vmem:[#allocation28_spill] sm:$0xff] %v3935_v14  ;;  %2798 = vpow2.f32 %v1834_v5  ;;  %v1838_v52 = vmul.f32 1.442695, %v1732_v6  ;;  %v1840_v57 = vmul.f32 1.442695, %v1733_v45  ;;  %v1933_v3 = vadd.f32 %v3935_v14, %v3931_v43 }
 0x66f   : >> { %2800 = vpow2.f32 %v1836_v19 }
 0x670   : >> { %v3939_v20 = vpop.eup %2790  ;;  %2802 = vpow2.f32 %v1838_v52  ;;  %1934 = vadd.xlane.f32.xlu1 %v1933_v3  ;;  %v4361_v52 = vld [vmem:[#allocation35_spill] sm:$0xff] }
 0x671   : >> { %v3941_v33 = vpop.eup %2792  ;;  %2804 = vpow2.f32 %v1840_v57  ;;  %v1662_v23 = vpop.xlane.xlu0 %1661 }
 0x672   : >> { %v1734_v10 = vsub.f32 %v4358_v54, %v1662_v23  ;;  %v1735_v50 = vsub.f32 %v4359_v60, %v1662_v23  ;;  %v1936_v5 = vadd.f32 %v3941_v33, %v3939_v20 }
 0x673   : >> { %v1665_v45 = vpop.xlane.xlu1 %1664 }
 0x674   : >> { %v3947_v6 = vpop.eup %2794  ;;  %v1842_v12 = vmul.f32 1.442695, %v1734_v10  ;;  %v1844_v19 = vmul.f32 1.442695, %v1735_v50  ;;  %v1736_v43 = vsub.f32 %v4360_v13, %v1665_v45  ;;  %v1737_v3 = vsub.f32 %v4361_v52, %v1665_v45  ;;  %1937 = vadd.xlane.f32.xlu0 %v1936_v5 }
 0x675   : >> { %v3951_v14 = vpop.eup %2796 }
 0x676   : >> { %2806 = vpow2.f32 %v1842_v12  ;;  %v1846_v57 = vmul.f32 1.442695, %v1736_v43  ;;  %v1848_v54 = vmul.f32 1.442695, %v1737_v3  ;;  %v1939_v23 = vadd.f32 %v3951_v14, %v3947_v6 }
 0x677   : >> { %2808 = vpow2.f32 %v1844_v19 }
 0x678   : >> { %v3955_v60 = vpop.eup %2798  ;;  %2810 = vpow2.f32 %v1846_v57  ;;  %1940 = vadd.xlane.f32.xlu1 %v1939_v23 }
 0x679   : >> { %4362 = vst [vmem:[#allocation29_spill] sm:$0xff] %v3955_v60  ;;  %v3957_v10 = vpop.eup %2800  ;;  %2812 = vpow2.f32 %v1848_v54 }
 0x67a   : >> { %4363 = vst [vmem:[#allocation30_spill] sm:$0xff] %v3957_v10  ;;  %v3959_v13 = vpop.eup %2802  ;;  %v1942_v50 = vadd.f32 %v3957_v10, %v3955_v60 }
 0x67b   : >> { %4364 = vst [vmem:[#allocation31_spill] sm:$0xff] %v3959_v13  ;;  %v3963_v5 = vpop.eup %2804 }
 0x67c   : >> { %4365 = vst [vmem:[#allocation32_spill] sm:$0xff] %v3963_v5  ;;  %1943 = vadd.xlane.f32.xlu0 %v1942_v50  ;;  %v1945_v43 = vadd.f32 %v3963_v5, %v3959_v13 }
 0x67e   : >> { %1946 = vadd.xlane.f32.xlu1 %v1945_v43 }
 0x680   : >> { %v3967_v45 = vpop.eup %2806 }
 0x681   : >> { %4366 = vst [vmem:[#allocation33_spill] sm:$0xff] %v3967_v45  ;;  %v3969_v12 = vpop.eup %2808 }
 0x682   : >> { %4367 = vst [vmem:[#allocation34_spill] sm:$0xff] %v3969_v12  ;;  %v3971_v19 = vpop.eup %2810  ;;  %v1948_v52 = vadd.f32 %v3969_v12, %v3967_v45 }
 0x683   : >> { %4368 = vst [vmem:[#allocation35_spill] sm:$0xff] %v3971_v19  ;;  %v3975_v3 = vpop.eup %2812 }
 0x684   : >> { %4369 = vst [vmem:[#allocation36_spill] sm:$0xff] %v3975_v3  ;;  %1949 = vadd.xlane.f32.xlu0 %v1948_v52  ;;  %v1951_v57 = vadd.f32 %v3975_v3, %v3971_v19 }
 0x686   : >> { %1952 = vadd.xlane.f32.xlu1 %v1951_v57 }
 0x6b9   : >> { %v1884_v54 = vpop.xlane.xlu0 %1883 }
 0x6ba   : >> { %2814 = vrcp.f32 %v1884_v54 }
 0x6bd   : >> { %v1887_v23 = vpop.xlane.xlu1 %1886  ;;  %v1668_v50 = vpop.xlane.xlu0 %1667 }
 0x6be   : >> { %2816 = vrcp.f32 %v1887_v23  ;;  %v1738_v43 = vsub.f32 %v3715_v61, %v1668_v50  ;;  %v1739_v60 = vsub.f32 %v3717_v39, %v1668_v50 }
 0x6c0   : >> { %v1850_v13 = vmul.f32 1.442695, %v1738_v43  ;;  %v1852_v5 = vmul.f32 1.442695, %v1739_v60 }
 0x6c1   : >> { %v1890_v10 = vpop.xlane.xlu0 %1889  ;;  %v1671_v45 = vpop.xlane.xlu1 %1670 }
 0x6c2   : >> { %2818 = vpow2.f32 %v1850_v13  ;;  %v1740_v52 = vsub.f32 %v3719_v18, %v1671_v45  ;;  %v1741_v12 = vsub.f32 %v3723_v38, %v1671_v45 }
 0x6c3   : >> { %2820 = vpow2.f32 %v1852_v5 }
 0x6c4   : >> { %2822 = vrcp.f32 %v1890_v10  ;;  %v1854_v57 = vmul.f32 1.442695, %v1740_v52  ;;  %v1856_v54 = vmul.f32 1.442695, %v1741_v12  ;;  %v2815_v23 = vpop.eup %2814 }
 0x6c5   : >> { %v1893_v19 = vpop.xlane.xlu1 %1892  ;;  %v1674_v3 = vpop.xlane.xlu0 %1673  ;;  %v2011_v38 = vmul.f32 %v2815_v23, %v3773_v56  ;;  %v2010_v5 = vmul.f32 %v2815_v23, %v3771_v11 }
 0x6c6   : >> { %2824 = vpow2.f32 %v1854_v57  ;;  %v1742_v61 = vsub.f32 %v3727_v25, %v1674_v3  ;;  %v1743_v39 = vsub.f32 %v3729_v1, %v1674_v3 }
 0x6c7   : >> { %2826 = vpow2.f32 %v1856_v54 }
 0x6c8   : >> { %v2817_v60 = vpop.eup %2816  ;;  %2828 = vrcp.f32 %v1893_v19  ;;  %v1858_v13 = vmul.f32 1.442695, %v1742_v61  ;;  %v1860_v50 = vmul.f32 1.442695, %v1743_v39 }
 0x6c9   : >> { %v1896_v18 = vpop.xlane.xlu0 %1895  ;;  %v1677_v43 = vpop.xlane.xlu1 %1676  ;;  %v2013_v10 = vmul.f32 %v2817_v60, %v3781_v42  ;;  %v2012_v45 = vmul.f32 %v2817_v60, %v3779_v17 }
 0x6ca   : >> { %2830 = vpow2.f32 %v1858_v13  ;;  %v1744_v25 = vsub.f32 %v3731_v7, %v1677_v43  ;;  %v1745_v1 = vsub.f32 %v3735_v24, %v1677_v43 }
 0x6cb   : >> { %2832 = vpow2.f32 %v1860_v50  ;;  %v2075_v12 = vpack.c.bf16 %v2013_v10, %v2011_v38  ;;  %v2074_v19 = vpack.c.bf16 %v2012_v45, %v2010_v5 }
 0x6cc   : >> { %v3991_v3 = vpop.eup %2818  ;;  %2834 = vrcp.f32 %v1896_v18  ;;  %v1862_v52 = vmul.f32 1.442695, %v1744_v25  ;;  %v1864_v57 = vmul.f32 1.442695, %v1745_v1 }
 0x6cd   : >> { %v3993_v56 = vpop.eup %2820  ;;  %2106 = vmatprep.subr.bf16.mxu1 %v2075_v12  ;;  %v1899_v42 = vpop.xlane.xlu1 %1898 }
 0x6ce   : >> { %v1680_v11 = vpop.xlane.xlu0 %1679  ;;  %v2823_v54 = vpop.eup %2822  ;;  %2836 = vpow2.f32 %v1862_v52  ;;  %2107 = vmatpush1.bf16.xpose.msra.mxu1 %v2074_v19  ;;  %v1954_v24 = vadd.f32 %v3993_v56, %v3991_v3 }
 0x6cf   : >> { %v1746_v17 = vsub.f32 %v3739_v15, %v1680_v11  ;;  %v1747_v7 = vsub.f32 %v3741_v27, %v1680_v11  ;;  %2838 = vpow2.f32 %v1864_v57  ;;  %v2015_v18 = vmul.f32 %v2823_v54, %v3792_v62 }
 0x6d0   : >> { %v3999_v23 = vpop.eup %2824  ;;  %2840 = vrcp.f32 %v1899_v42  ;;  %1955 = vadd.xlane.f32.xlu0 %v1954_v24  ;;  %v2014_v5 = vmul.f32 %v2823_v54, %v3787_v21 }
 0x6d1   : >> { %v1866_v61 = vmul.f32 1.442695, %v1746_v17  ;;  %v1868_v39 = vmul.f32 1.442695, %v1747_v7  ;;  %v4001_v60 = vpop.eup %2826  ;;  %v1683_v50 = vpop.xlane.xlu1 %1682 }
 0x6d2   : >> { %v1902_v13 = vpop.xlane.xlu0 %1901  ;;  %v2829_v15 = vpop.eup %2828  ;;  %v1748_v27 = vsub.f32 %v3743_v4, %v1683_v50  ;;  %v1749_v43 = vsub.f32 %v3747_v26, %v1683_v50  ;;  %v1957_v38 = vadd.f32 %v4001_v60, %v3999_v23 }
 0x6d3   : >> { %2842 = vpow2.f32 %v1866_v61  ;;  %v2017_v10 = vmul.f32 %v2829_v15, %v3803_v16  ;;  %v2016_v45 = vmul.f32 %v2829_v15, %v3798_v53 }
 0x6d4   : >> { %2844 = vpow2.f32 %v1868_v39  ;;  %v4011_v25 = vpop.eup %2830  ;;  %v1870_v1 = vmul.f32 1.442695, %v1748_v27  ;;  %v1872_v62 = vmul.f32 1.442695, %v1749_v43  ;;  %1958 = vadd.xlane.f32.xlu1 %v1957_v38 }
 0x6d5   : >> { %v4013_v12 = vpop.eup %2832  ;;  %2846 = vrcp.f32 %v1902_v13  ;;  %v2077_v4 = vpack.c.bf16 %v2017_v10, %v2015_v18  ;;  %v1905_v26 = vpop.xlane.xlu1 %1904  ;;  %v2076_v52 = vpack.c.bf16 %v2016_v45, %v2014_v5 }
 0x6d6   : >> { %v1686_v19 = vpop.xlane.xlu0 %1685  ;;  %v2835_v57 = vpop.eup %2834  ;;  %2848 = vpow2.f32 %v1870_v1  ;;  %v1960_v53 = vadd.f32 %v4013_v12, %v4011_v25 }
 0x6d7   : >> { %v1750_v16 = vsub.f32 %v3751_v0, %v1686_v19  ;;  %v1751_v21 = vsub.f32 %v3753_v36, %v1686_v19  ;;  %2850 = vpow2.f32 %v1872_v62  ;;  %2108 = vmatprep.subr.bf16.mxu1 %v2077_v4  ;;  %v2019_v24 = vmul.f32 %v2835_v57, %v3814_v58 }
 0x6d8   : >> { %v4019_v42 = vpop.eup %2836  ;;  %2852 = vrcp.f32 %v1905_v26  ;;  %2109 = vmatpush1.bf16.xpose.msra.mxu1 %v2076_v52  ;;  %1961 = vadd.xlane.f32.xlu0 %v1960_v53  ;;  %v2018_v18 = vmul.f32 %v2835_v57, %v3809_v41 }
 0x6d9   : >> { %v1874_v11 = vmul.f32 1.442695, %v1750_v16  ;;  %v1876_v54 = vmul.f32 1.442695, %v1751_v21  ;;  %v4021_v17 = vpop.eup %2838  ;;  %v1689_v7 = vpop.xlane.xlu1 %1688 }
 0x6da   : >> { %v2841_v0 = vpop.eup %2840  ;;  %v1908_v36 = vpop.xlane.xlu0 %1907  ;;  %v1752_v61 = vsub.f32 %v3755_v55, %v1689_v7  ;;  %v1753_v39 = vsub.f32 %v3759_v37, %v1689_v7  ;;  %v1963_v13 = vadd.f32 %v4021_v17, %v4019_v42 }
 0x6db   : >> { %2854 = vpow2.f32 %v1874_v11  ;;  %v2021_v50 = vmul.f32 %v2841_v0, %v3827_v44  ;;  %v2020_v15 = vmul.f32 %v2841_v0, %v3820_v2 }
 0x6dc   : >> { %2856 = vpow2.f32 %v1876_v54  ;;  %v1878_v58 = vmul.f32 1.442695, %v1752_v61  ;;  %v1880_v43 = vmul.f32 1.442695, %v1753_v39  ;;  %1964 = vadd.xlane.f32.xlu1 %v1963_v13 }
 0x6dd   : >> { %v4031_v27 = vpop.eup %2842  ;;  %2858 = vrcp.f32 %v1908_v36  ;;  %v2079_v55 = vpack.c.bf16 %v2021_v50, %v2019_v24  ;;  %v1911_v37 = vpop.xlane.xlu1 %1910  ;;  %v2078_v10 = vpack.c.bf16 %v2020_v15, %v2018_v18 }
 0x6de   : >> { %v4033_v38 = vpop.eup %2844  ;;  %2860 = vpow2.f32 %v1878_v58 }
 0x6df   : >> { %v1966_v5 = vadd.f32 %v4033_v38, %v4031_v27  ;;  %v2847_v44 = vpop.eup %2846  ;;  %2862 = vpow2.f32 %v1880_v43  ;;  %2110 = vmatprep.subr.bf16.mxu1 %v2079_v55 }
 0x6e0   : >> { %v4037_v41 = vpop.eup %2848  ;;  %2864 = vrcp.f32 %v1911_v37  ;;  %2111 = vmatpush1.bf16.xpose.msra.mxu1 %v2078_v10  ;;  %v2023_v4 = vmul.f32 %v2847_v44, %v3836_v46  ;;  %v2022_v19 = vmul.f32 %v2847_v44, %v3831_v34 }
 0x6e1   : >> { %1967 = vadd.xlane.f32.xlu0 %v1966_v5  ;;  %v4039_v2 = vpop.eup %2850  ;;  %v1914_v45 = vpop.xlane.xlu0 %1913 }
 0x6e2   : >> { %v2853_v1 = vpop.eup %2852  ;;  %v1969_v62 = vadd.f32 %v4039_v2, %v4037_v41  ;;  %2866 = vrcp.f32 %v1914_v45 }
 0x6e3   : >> { %v2025_v26 = vmul.f32 %v2853_v1, %v3847_v9  ;;  %v2024_v52 = vmul.f32 %v2853_v1, %v3842_v32 }
 0x6e4   : >> { %1970 = vadd.xlane.f32.xlu1 %v1969_v62 }
 0x6e5   : >> { %v4047_v57 = vpop.eup %2854  ;;  %v2081_v21 = vpack.c.bf16 %v2025_v26, %v2023_v4  ;;  %v1917_v53 = vpop.xlane.xlu1 %1916  ;;  %v2080_v11 = vpack.c.bf16 %v2024_v52, %v2022_v19 }
 0x6e6   : >> { %v4049_v16 = vpop.eup %2856  ;;  %2868 = vrcp.f32 %v1917_v53  ;;  %v4370_v53 = vld [vmem:[#allocation25_spill] sm:$0xff] }
 0x6e7   : >> { %v1972_v54 = vadd.f32 %v4049_v16, %v4047_v57  ;;  %v2859_v46 = vpop.eup %2858  ;;  %2112 = vmatprep.subr.bf16.mxu1 %v2081_v21 }
 0x6e8   : >> { %v4053_v9 = vpop.eup %2860  ;;  %2113 = vmatpush1.bf16.xpose.msra.mxu1 %v2080_v11  ;;  %v2027_v0 = vmul.f32 %v2859_v46, %v3858_v31  ;;  %v2026_v61 = vmul.f32 %v2859_v46, %v3853_v28  ;;  %v4371_v11 = vld [vmem:[#allocation24_spill] sm:$0xff] }
 0x6e9   : >> { %1973 = vadd.xlane.f32.xlu0 %v1972_v54  ;;  %v4055_v34 = vpop.eup %2862  ;;  %v1920_v32 = vpop.xlane.xlu0 %1919  ;;  %v4372_v54 = vld [vmem:[#allocation23_spill] sm:$0xff] }
 0x6ea   : >> { %v2865_v7 = vpop.eup %2864  ;;  %v1975_v24 = vadd.f32 %v4055_v34, %v4053_v9  ;;  %2870 = vrcp.f32 %v1920_v32 }
 0x6eb   : >> { %v2029_v36 = vmul.f32 %v2865_v7, %v3866_v30  ;;  %v2028_v39 = vmul.f32 %v2865_v7, %v3860_v29 }
 0x6ec   : >> { %1976 = vadd.xlane.f32.xlu1 %v1975_v24  ;;  %v2867_v15 = vpop.eup %2866 }
 0x6ed   : >> { %v2083_v13 = vpack.c.bf16 %v2029_v36, %v2027_v0  ;;  %v1923_v50 = vpop.xlane.xlu1 %1922  ;;  %v2082_v18 = vpack.c.bf16 %v2028_v39, %v2026_v61  ;;  %v2031_v55 = vmul.f32 %v2867_v15, %v3877_v40  ;;  %v2030_v28 = vmul.f32 %v2867_v15, %v3875_v48  ;;  %v4374_v39 = vld [vmem:[#allocation27_spill] sm:$0xff] }
 0x6ee   : >> { %2872 = vrcp.f32 %v1923_v50  ;;  %v4375_v50 = vld [vmem:[#allocation26_spill] sm:$0xff] }
 0x6ef   : >> { %2114 = vmatprep.subr.bf16.mxu1 %v2083_v13 }
 0x6f0   : >> { %v2869_v58 = vpop.eup %2868  ;;  %2115 = vmatpush1.bf16.xpose.msra.mxu1 %v2082_v18 }
 0x6f1   : >> { %v1926_v43 = vpop.xlane.xlu0 %1925  ;;  %v2033_v31 = vmul.f32 %v2869_v58, %v3885_v51  ;;  %v2032_v30 = vmul.f32 %v2869_v58, %v3883_v59 }
 0x6f2   : >> { %2874 = vrcp.f32 %v1926_v43 }
 0x6f3   : >> { %v2085_v29 = vpack.c.bf16 %v2033_v31, %v2031_v55  ;;  %v2084_v37 = vpack.c.bf16 %v2032_v30, %v2030_v28 }
 0x6f4   : >> { %v2871_v5 = vpop.eup %2870 }
 0x6f5   : >> { %2116 = vmatprep.subr.bf16.mxu1 %v2085_v29  ;;  %v1929_v10 = vpop.xlane.xlu1 %1928  ;;  %v2035_v1 = vmul.f32 %v2871_v5, %v3893_v47  ;;  %v2034_v59 = vmul.f32 %v2871_v5, %v3891_v63 }
 0x6f6   : >> { %2876 = vrcp.f32 %v1929_v10 }
 0x6f8   : >> { %v2873_v44 = vpop.eup %2872  ;;  %2117 = vmatpush1.bf16.xpose.msra.mxu1 %v2084_v37 }
 0x6f9   : >> { %v1932_v45 = vpop.xlane.xlu0 %1931  ;;  %v2037_v40 = vmul.f32 %v2873_v44, %v3901_v22  ;;  %v2036_v51 = vmul.f32 %v2873_v44, %v3899_v8 }
 0x6fa   : >> { %2878 = vrcp.f32 %v1932_v45 }
 0x6fb   : >> { %v2087_v62 = vpack.c.bf16 %v2037_v40, %v2035_v1  ;;  %v2086_v48 = vpack.c.bf16 %v2036_v51, %v2034_v59  ;;  %v4376_v59 = vld [vmem:[#allocation30_spill] sm:$0xff] }
 0x6fc   : >> { %v2875_v26 = vpop.eup %2874 }
 0x6fd   : >> { %2118 = vmatprep.subr.bf16.mxu1 %v2087_v62  ;;  %v1935_v4 = vpop.xlane.xlu1 %1934  ;;  %v2039_v21 = vmul.f32 %v2875_v26, %v3909_v35  ;;  %v2038_v8 = vmul.f32 %v2875_v26, %v4372_v54  ;;  %v4373_v35 = vld [vmem:[#allocation28_spill] sm:$0xff] }
 0x6fe   : >> { %2880 = vrcp.f32 %v1935_v4 }
 0x700   : >> { %v2877_v19 = vpop.eup %2876  ;;  %2119 = vmatpush1.bf16.xpose.msra.mxu1 %v2086_v48  ;;  %v4377_v48 = vld [vmem:[#allocation32_spill] sm:$0xff] }
 0x701   : >> { %v1938_v52 = vpop.xlane.xlu0 %1937  ;;  %v2041_v47 = vmul.f32 %v2877_v19, %v4370_v53  ;;  %v2040_v22 = vmul.f32 %v2877_v19, %v4371_v11  ;;  %v4379_v19 = vld [vmem:[#allocation29_spill] sm:$0xff]  ;;  %v4380_v53 = vld [vmem:[#allocation34_spill] sm:$0xff]  ;;  %v4381_v11 = vld [vmem:[#allocation36_spill] sm:$0xff] }
 0x702   : >> { %2882 = vrcp.f32 %v1938_v52 }
 0x703   : >> { %v2089_v63 = vpack.c.bf16 %v2041_v47, %v2039_v21  ;;  %v2088_v46 = vpack.c.bf16 %v2040_v22, %v2038_v8  ;;  %v4382_v8 = vld [vmem:[#allocation35_spill] sm:$0xff] }
 0x704   : >> { %v2879_v7 = vpop.eup %2878 }
 0x705   : >> { %2120 = vmatprep.subr.bf16.mxu1 %v2089_v63  ;;  %v1941_v32 = vpop.xlane.xlu1 %1940  ;;  %v2043_v36 = vmul.f32 %v2879_v7, %v3925_v49  ;;  %v2042_v18 = vmul.f32 %v2879_v7, %v4375_v50  ;;  %v1310_v49 = vld [vmem:[%s4080_s17 + $0x8] sm:$0xff] }
 0x706   : >> { %2884 = vrcp.f32 %v1941_v32  ;;  %v1312_v31 = vpack.c.bf16 %v1310_v49, %v1310_v49 }
 0x708   : >> { %v2881_v24 = vpop.eup %2880  ;;  %2121 = vmatpush1.bf16.xpose.msra.mxu1 %v2088_v46  ;;  %2138 = vmatprep.mubr.bf16.mxu1 %v1312_v31  ;;  %v4383_v46 = vld [vmem:[#allocation33_spill] sm:$0xff] }
 0x709   : >> { %v1944_v0 = vpop.xlane.xlu0 %1943  ;;  %v2045_v61 = vmul.f32 %v2881_v24, %v4373_v35  ;;  %v2044_v13 = vmul.f32 %v2881_v24, %v4374_v39 }
 0x70a   : >> { %2886 = vrcp.f32 %v1944_v0 }
 0x70b   : >> { %v1947_v15 = vpop.xlane.xlu1 %1946  ;;  %v2091_v58 = vpack.c.bf16 %v2045_v61, %v2043_v36  ;;  %v2090_v43 = vpack.c.bf16 %v2044_v13, %v2042_v18 }
 0x70c   : >> { %2888 = vrcp.f32 %v1947_v15  ;;  %v2883_v55 = vpop.eup %2882 }
 0x70d   : >> { %2122 = vmatprep.subr.bf16.mxu1 %v2091_v58  ;;  %v2047_v29 = vmul.f32 %v2883_v55, %v3941_v33  ;;  %v2046_v5 = vmul.f32 %v2883_v55, %v3939_v20 }
 0x710   : >> { %v2885_v30 = vpop.eup %2884  ;;  %2123 = vmatpush1.bf16.xpose.msra.mxu1 %v2090_v43 }
 0x711   : >> { %v1950_v28 = vpop.xlane.xlu0 %1949  ;;  %v2049_v37 = vmul.f32 %v2885_v30, %v3951_v14  ;;  %v2048_v10 = vmul.f32 %v2885_v30, %v3947_v6  ;;  %v4378_v14 = vld [vmem:[#allocation31_spill] sm:$0xff] }
 0x712   : >> { %2890 = vrcp.f32 %v1950_v28 }
 0x713   : >> { %v1953_v44 = vpop.xlane.xlu1 %1952  ;;  %v2093_v45 = vpack.c.bf16 %v2049_v37, %v2047_v29  ;;  %v2092_v40 = vpack.c.bf16 %v2048_v10, %v2046_v5 }
 0x714   : >> { %v2887_v1 = vpop.eup %2886  ;;  %2892 = vrcp.f32 %v1953_v44 }
 0x715   : >> { %2124 = vmatprep.subr.bf16.mxu1 %v2093_v45  ;;  %v2051_v62 = vmul.f32 %v2887_v1, %v4376_v59  ;;  %v2050_v52 = vmul.f32 %v2887_v1, %v4379_v19 }
 0x716   : >> { %v2889_v51 = vpop.eup %2888 }
 0x717   : >> { %v2053_v4 = vmul.f32 %v2889_v51, %v4377_v48  ;;  %v2052_v26 = vmul.f32 %v2889_v51, %v4378_v14 }
 0x718   : >> { %2125 = vmatpush1.bf16.xpose.msra.mxu1 %v2092_v40 }
 0x719   : >> { %v2095_v33 = vpack.c.bf16 %v2053_v4, %v2051_v62  ;;  %v2094_v21 = vpack.c.bf16 %v2052_v26, %v2050_v52 }
 0x71b   : >> { %2126 = vmatprep.subr.bf16.mxu1 %v2095_v33 }
 0x71c   : >> { %v2891_v6 = vpop.eup %2890 }
 0x71d   : >> { %v2055_v47 = vmul.f32 %v2891_v6, %v4380_v53  ;;  %v2054_v32 = vmul.f32 %v2891_v6, %v4383_v46  ;;  %v4384_v6 = vmov (%p1279_p11), 0  }
 0x71e   : >> { %v2893_v20 = vpop.eup %2892  ;;  %2247 = vmatprep.mubr.bf16.mxu0 (%p1279_p11), %v4384_v6  ;;  %2911 = vset.pattern.permute.xlu1 (%p1279_p11), %v4384_v6 }
 0x71f   : >> { %v2057_v22 = vmul.f32 %v2893_v20, %v4381_v11  ;;  %v2056_v63 = vmul.f32 %v2893_v20, %v4382_v8  ;;  %2910 = vset.pattern.permute.xlu0 (%p1279_p11), %v4384_v6 }
 0x720   : >> { %2127 = vmatpush1.bf16.xpose.msra.mxu1 %v2094_v21 }
 0x721   : >> { %v2097_v54 = vpack.c.bf16 %v2057_v22, %v2055_v47  ;;  %v2096_v7 = vpack.c.bf16 %v2056_v63, %v2054_v32 }
 0x723   : >> { %2128 = vmatprep.subr.bf16.mxu1 %v2097_v54 }
 0x728   : >> { %2129 = vmatpush1.bf16.xpose.msra.mxu1 %v2096_v7 }
 0x75d   : >> { %v1956_v24 = vpop.xlane.xlu0 %1955 }
 0x75e   : >> { %2894 = vrcp.f32 %v1956_v24 }
 0x761   : >> { %v1959_v0 = vpop.xlane.xlu1 %1958 }
 0x762   : >> { %2896 = vrcp.f32 %v1959_v0 }
 0x765   : >> { %v1962_v36 = vpop.xlane.xlu0 %1961 }
 0x766   : >> { %2898 = vrcp.f32 %v1962_v36 }
 0x768   : >> { %v2895_v61 = vpop.eup %2894 }
 0x769   : >> { %v1965_v35 = vpop.xlane.xlu1 %1964  ;;  %v2059_v50 = vmul.f32 %v2895_v61, %v3993_v56  ;;  %v2058_v15 = vmul.f32 %v2895_v61, %v3991_v3 }
 0x76a   : >> { %2900 = vrcp.f32 %v1965_v35 }
 0x76c   : >> { %v2897_v39 = vpop.eup %2896 }
 0x76d   : >> { %v2061_v18 = vmul.f32 %v2897_v39, %v4001_v60  ;;  %v2060_v58 = vmul.f32 %v2897_v39, %v3999_v23 }
 0x76e   : >> { %v1968_v13 = vpop.xlane.xlu0 %1967 }
 0x76f   : >> { %v2099_v43 = vpack.c.bf16 %v2061_v18, %v2059_v50  ;;  %v2098_v55 = vpack.c.bf16 %v2060_v58, %v2058_v15  ;;  %2902 = vrcp.f32 %v1968_v13  ;;  %v2306_v13 = vld [vmem:[%s4257_s7 + $0x10] sm:$0xff] (%p1279_p11)  ;;  %v2304_v50 = vld [vmem:[%s4257_s7] sm:$0xff] (%p1279_p11)  ;;  %v2307_v18 = vld [vmem:[%s4257_s7 + $0x18] sm:$0xff] (%p1279_p11) }
 0x770   : >> { %v2899_v31 = vpop.eup %2898  ;;  %2324 = vperm.xlu1 (%p1279_p11), %2911, %v2306_v13   ;;  %2314 = vperm.xlu0 (%p1279_p11), %2910, %v2304_v50   ;;  %v2305_v15 = vld [vmem:[%s4257_s7 + $0x8] sm:$0xff] (%p1279_p11) }
 0x771   : >> { %2130 = vmatprep.subr.bf16.mxu1 %v2099_v43  ;;  %v1971_v49 = vpop.xlane.xlu1 %1970  ;;  %v2063_v29 = vmul.f32 %v2899_v31, %v4013_v12  ;;  %v2062_v60 = vmul.f32 %v2899_v31, %v4011_v25  ;;  %v2912_v43 = vld [vmem:[%s4256_s6] sm:$0xff] (%p1279_p11)  }
 0x772   : >> { %2904 = vrcp.f32 %v1971_v49  ;;  %2131 = vmatpush1.bf16.xpose.msra.mxu1 %v2098_v55  ;;  %v2913_v55 = vld [vmem:[%s4256_s6 + $0x10] sm:$0xff] (%p1279_p11)   ;;  %v2309_v49 = vld [vmem:[%s4257_s7 + $0x28] sm:$0xff] (%p1279_p11)  ;;  %v2308_v31 = vld [vmem:[%s4257_s7 + $0x20] sm:$0xff] (%p1279_p11) }
 0x774   : >> { %v2901_v30 = vpop.eup %2900  ;;  %2329 = vperm.xlu1 (%p1279_p11), %2911, %v2307_v18   ;;  %2319 = vperm.xlu0 (%p1279_p11), %2910, %v2305_v15  }
 0x775   : >> { %v2065_v56 = vmul.f32 %v2901_v30, %v4021_v17  ;;  %v2064_v3 = vmul.f32 %v2901_v30, %v4019_v42  ;;  %v2311_v30 = vld [vmem:[%s4257_s7 + $0x38] sm:$0xff] (%p1279_p11) }
 0x776   : >> { %v1974_v28 = vpop.xlane.xlu0 %1973 }
 0x777   : >> { %v2101_v37 = vpack.c.bf16 %v2065_v56, %v2063_v29  ;;  %v2100_v23 = vpack.c.bf16 %v2064_v3, %v2062_v60  ;;  %2906 = vrcp.f32 %v1974_v28  ;;  %v2310_v28 = vld [vmem:[%s4257_s7 + $0x30] sm:$0xff] (%p1279_p11)  ;;  %v2914_v29 = vld [vmem:[%s4256_s6 + $0x8] sm:$0xff] (%p1279_p11)   ;;  %v2915_v56 = vld [vmem:[%s4256_s6 + $0x18] sm:$0xff] (%p1279_p11)  }
 0x778   : > { %2339 = vperm.xlu1 (%p1279_p11), %2911, %v2309_v49   ;;  %2334 = vperm.xlu0 (%p1279_p11), %2910, %v2308_v31  }
 0x779   : >> { %2132 = vmatprep.subr.bf16.mxu1 %v2101_v37  ;;  %v1977_v10 = vpop.xlane.xlu1 %1976  ;;  %v2903_v5 = vpop.eup %2902 }
 0x77a   : >> { %2908 = vrcp.f32 %v1977_v10  ;;  %2133 = vmatpush1.bf16.xpose.msra.mxu1 %v2100_v23  ;;  %v2067_v45 = vmul.f32 %v2903_v5, %v4033_v38  ;;  %v2066_v12 = vmul.f32 %v2903_v5, %v4031_v27 }
 0x77c   : >> { %v2905_v44 = vpop.eup %2904  ;;  %2349 = vperm.xlu1 (%p1279_p11), %2911, %v2311_v30   ;;  %2344 = vperm.xlu0 (%p1279_p11), %2910, %v2310_v28  }
 0x77d   : >> { %v2069_v1 = vmul.f32 %v2905_v44, %v4039_v2  ;;  %v2068_v25 = vmul.f32 %v2905_v44, %v4037_v41  ;;  %v1309_v41 = vld [vmem:[%s4080_s17] sm:$0xff]  ;;  %s2920_s17 = sshll.u32 (%p1279_p11), %s2993_s12, 4  ;;  %s2921_s17 = int_to_ptr.vmem [resolvable:$false] %s2920_s17 }
 0x77e   : >> { %v1311_v4 = vpack.c.bf16 %v1309_v41, %v1309_v41  ;;  %v4389_v41 = vld [vmem:[#allocation11_spill] sm:$0xff] (%p1279_p11)  ;;  %p2923_p1 = scmp.lt.s32.totalorder (%p1279_p11), %s4198_s19, %s2921_s17 }
 0x77f   : >> { %v2103_v17 = vpack.c.bf16 %v2069_v1, %v2067_v45  ;;  %v2102_v42 = vpack.c.bf16 %v2068_v25, %v2066_v12  ;;  %v4385_v45 = vld [vmem:[#allocation9_spill] sm:$0xff] (%p1279_p11) }
 0x780   : > { %v4386_v12 = vld [vmem:[#allocation17_spill] sm:$0xff] (%p1279_p11) }
 0x781   : >> { %2134 = vmatprep.subr.bf16.mxu1 %v2103_v17  ;;  %v2907_v40 = vpop.eup %2906 }
 0x782   : >> { %2135 = vmatpush1.bf16.xpose.msra.mxu1 %v2102_v42  ;;  %v2071_v59 = vmul.f32 %v2907_v40, %v4049_v16  ;;  %v2070_v38 = vmul.f32 %v2907_v40, %v4047_v57  ;;  %v4387_v40 = vld [vmem:[#allocation10_spill] sm:$0xff] (%p1279_p11) }
 0x784   : >> { %v2909_v51 = vpop.eup %2908 }
 0x785   : >> { %v2073_v62 = vmul.f32 %v2909_v51, %v4055_v34  ;;  %v2072_v2 = vmul.f32 %v2909_v51, %v4053_v9 }
 0x787   : >> { %v2105_v48 = vpack.c.bf16 %v2073_v62, %v2071_v59  ;;  %v2104_v27 = vpack.c.bf16 %v2072_v2, %v2070_v38  ;;  %v4388_v59 = vld [vmem:[#allocation18_spill] sm:$0xff] (%p1279_p11) }
 0x789   : >> { %2136 = vmatprep.subr.bf16.mxu1 %v2105_v48 }
 0x78a   : >> { %2137 = vmatpush1.bf16.xpose.msra.mxu1 %v2104_v27 }
 0x791   : >> { %2139 = vmatmul.mubr.bf16.vlgmr.msra.gmra.mrb[0].mxu1 %v1311_v4 }
 0x792   : > { %2267 = vmatprep.mubr.bf16.mxu1 (%p1279_p11), %v4384_v6 }
 0x7ef   : > { %v2315_v60 = vpop.permute.xlu0 (%p1279_p11), %2314  ;;  %v2325_v3 = vpop.permute.xlu1 (%p1279_p11), %2324 }
 0x7f3   : > { %v2320_v37 = vpop.permute.xlu0 (%p1279_p11), %2319  ;;  %v4162_v23 = vpop.permute.xlu1 (%p1279_p11), %2329 }
 0x7f7   : > { %v2335_v10 = vpop.permute.xlu0 (%p1279_p11), %2334 }
 0x861   : > { %1281 = sbr.rel (!%p1279_p11) target bundleno = 1093 (0x445), region = 98 }
 0x864   : >> { %v2140_v33 = vpop.f32.mrb[0].mxu1 }
 0x865   : >> { %2149 = vst [vmem:[%s2148_s10] sm:$0xff] %v2140_v33  ;;  %v2142_v14 = vpop.f32.mrb[1].mxu1  ;;  %v4390_v33 = vld [vmem:[#allocation15_spill] sm:$0xff] (%p1279_p11) }
 0x866   : >> { %2150 = vst [vmem:[%s2148_s10 + $0x8] sm:$0xff] %v2142_v14  ;;  %v2144_v26 = vpop.f32.mrb[2].mxu1  ;;  %s2922_s10 = scalar_lea.vmem (%p1279_p11), %s2921_s17, 4096 }
 0x867   : >> { %v2145_v16 = vpop.f32.mrb[3].mxu1  ;;  %p2924_p2 = scmp.lt.s32.totalorder (%p1279_p11), %s2922_s10, %s2916_s13 }
 0x869   : > { %p2925_p3 = por %p2924_p2, %p2923_p1 }
 0x86b   : > { %p2926_p4 = pnand %p2925_p3, %p2919_p0 }
 0x86d   : > { %v2160_v57 = vld [vmem:[#allocation3 + $0x8] sm:$0xff]  ;;  %v2162_v9 = vld [vmem:[#allocation3 + $0x18] sm:$0xff]  ;;  %v2159_v34 = vld [vmem:[#allocation3] sm:$0xff] }
 0x86e   : > { %v2176_v19 = vpack.c.bf16 %v2162_v9, %v2160_v57  ;;  %v2161_v52 = vld [vmem:[#allocation3 + $0x10] sm:$0xff]  ;;  %v2164_v20 = vld [vmem:[#allocation3 + $0x28] sm:$0xff]  ;;  %v2166_v21 = vld [vmem:[#allocation3 + $0x38] sm:$0xff]  ;;  %v2340_v57 = vpop.permute.xlu1 %2339 }
 0x86f   : > { %v2175_v53 = vpack.c.bf16 %v2161_v52, %v2159_v34  ;;  %v2178_v47 = vpack.c.bf16 %v2166_v21, %v2164_v20  ;;  %v2163_v11 = vld [vmem:[#allocation3 + $0x20] sm:$0xff]  ;;  %v2165_v22 = vld [vmem:[#allocation3 + $0x30] sm:$0xff]  ;;  %v2168_v54 = vld [vmem:[#allocation3 + $0x48] sm:$0xff] }
 0x870   : > { %2215 = vmatprep.subr.bf16.mxu0 %v2176_v19  ;;  %2624 = vmatprep.subr.bf16.mxu1 %v2176_v19  ;;  %v2170_v8 = vld [vmem:[#allocation3 + $0x58] sm:$0xff]  ;;  %v2177_v63 = vpack.c.bf16 %v2165_v22, %v2163_v11  ;;  %v2167_v46 = vld [vmem:[#allocation3 + $0x40] sm:$0xff]  ;;  %v2169_v32 = vld [vmem:[#allocation3 + $0x50] sm:$0xff]  ;;  %v2345_v22 = vpop.permute.xlu0 %2344 }
 0x871   : > { %2216 = vmatpush1.bf16.msra.mxu0 %v2175_v53  ;;  %2628 = vmatpush1.bf16.msra.mxu1 %v2175_v53  ;;  %v2180_v7 = vpack.c.bf16 %v2170_v8, %v2168_v54  ;;  %v2172_v24 = vld [vmem:[#allocation3 + $0x68] sm:$0xff]  ;;  %v2174_v0 = vld [vmem:[#allocation3 + $0x78] sm:$0xff]  ;;  %v2179_v36 = vpack.c.bf16 %v2169_v32, %v2167_v46  ;;  %v2171_v35 = vld [vmem:[#allocation3 + $0x60] sm:$0xff] }
 0x872   : > { %2217 = vmatprep.subr.bf16.mxu0 %v2178_v47  ;;  %2625 = vmatprep.subr.bf16.mxu1 %v2178_v47  ;;  %v2182_v61 = vpack.c.bf16 %v2174_v0, %v2172_v24  ;;  %v2173_v39 = vld [vmem:[#allocation3 + $0x70] sm:$0xff]  ;;  %v4392_v52 = vld [vmem:[#allocation16_spill] sm:$0xff]  ;;  %v2350_v28 = vpop.permute.xlu1 %2349 }
 0x873   : > { %v2181_v58 = vpack.c.bf16 %v2173_v39, %v2171_v35  ;;  %v4394_v32 = vld [vmem:[#allocation21_spill] sm:$0xff] }
 0x875   : > { %2218 = vmatpush1.bf16.msra.mxu0 %v2177_v63  ;;  %2629 = vmatpush1.bf16.msra.mxu1 %v2177_v63  ;;  %v4393_v63 = vld [vmem:[#allocation13_spill] sm:$0xff] }
 0x876   : > { %2219 = vmatprep.subr.bf16.mxu0 %v2180_v7  ;;  %2626 = vmatprep.subr.bf16.mxu1 %v2180_v7 }
 0x879   : > { %2220 = vmatpush1.bf16.msra.mxu0 %v2179_v36  ;;  %2630 = vmatpush1.bf16.msra.mxu1 %v2179_v36  ;;  %v4395_v36 = vld [vmem:[#allocation14_spill] sm:$0xff] }
 0x87a   : > { %2221 = vmatprep.subr.bf16.mxu0 %v2182_v61  ;;  %2627 = vmatprep.subr.bf16.mxu1 %v2182_v61  ;;  %v4396_v61 = vld [vmem:[#allocation22_spill] sm:$0xff] }
 0x87d   : > { %2222 = vmatpush1.bf16.msra.mxu0 %v2181_v58  ;;  %2631 = vmatpush1.bf16.msra.mxu1 %v2181_v58  ;;  %v4397_v58 = vld [vmem:[#allocation7_spill] sm:$0xff] }
 0x880   : > { %2541 = vmatmul.mubr.msk.bf16.vlgmr.msra.gmra.mrb[0].mxu0 %vm402_vm0, %v2912_v43  ;;  %2543 = vmatmul.mubr.msk.bf16.vlgmr.msra.gmra.mrb[0].mxu1 %vm402_vm0, %v2913_v55  ;;  %v4398_v55 = vld [vmem:[#allocation19_spill] sm:$0xff] }
 0x881   : > { %2257 = vmatprep.mubr.bf16.mxu0 %v4384_v6  ;;  %2277 = vmatprep.mubr.bf16.mxu1 %v4384_v6  ;;  %v4391_v6 = vld [vmem:[#allocation12_spill] sm:$0xff] }
 0x888   : > { %2542 = vmatmul.mubr.msk.bf16.gmra.mrb[4].mxu0 %vm402_vm0, %v2914_v29  ;;  %2544 = vmatmul.mubr.msk.bf16.gmra.mrb[4].mxu1 %vm402_vm0, %v2915_v56 }
 0x953   : > { %v2249_v5 = vpop.f32.mrb[0].mxu0  ;;  %v2269_v44 = vpop.f32.mrb[0].mxu1 }
 0x954   : > { %v2288_v1 = vadd.f32 %v2249_v5, %v4385_v45  ;;  %v2296_v25 = vadd.f32 %v2269_v44, %v4386_v12  ;;  %v2251_v17 = vpop.f32.mrb[1].mxu0  ;;  %v2271_v42 = vpop.f32.mrb[1].mxu1 }
 0x955   : > { %v2289_v51 = vadd.f32 %v2251_v17, %v4387_v40  ;;  %v2297_v62 = vadd.f32 %v2271_v42, %v4388_v59  ;;  %v2253_v38 = vpop.f32.mrb[2].mxu0  ;;  %v2273_v2 = vpop.f32.mrb[2].mxu1 }
 0x956   : > { %v2352_v48 = vadd.f32 %v2315_v60, %v2288_v1  ;;  %v2360_v27 = vadd.f32 %v2335_v10, %v2296_v25  ;;  %v2290_v4 = vadd.f32 %v2253_v38, %v4389_v41  ;;  %v2298_v14 = vadd.f32 %v2273_v2, %v4390_v33  ;;  %v2255_v26 = vpop.f32.mrb[3].mxu0  ;;  %v2275_v16 = vpop.f32.mrb[3].mxu1 }
 0x957   : > { %v2353_v9 = vadd.f32 %v2315_v60, %v2289_v51  ;;  %v2361_v34 = vadd.f32 %v2335_v10, %v2297_v62  ;;  %v2291_v19 = vadd.f32 %v2255_v26, %v4391_v6  ;;  %v2299_v20 = vadd.f32 %v2275_v16, %v4392_v52  ;;  %v4399_v60 = vld [vmem:[#allocation8_spill] sm:$0xff] }
 0x958   : > { %2368 = vst [vmem:[%s3524_s25] sm:$0xff] %v2352_v48  ;;  %2376 = vst [vmem:[%s3524_s25 + $0x40] sm:$0xff] %v2360_v27  ;;  %v2354_v21 = vadd.f32 %v2320_v37, %v2290_v4  ;;  %v2362_v53 = vadd.f32 %v2340_v57, %v2298_v14  ;;  %v4400_v10 = vld [vmem:[#allocation20_spill] sm:$0xff] }
 0x959   : > { %2369 = vst [vmem:[%s3524_s25 + $0x8] sm:$0xff] %v2353_v9  ;;  %2377 = vst [vmem:[%s3524_s25 + $0x48] sm:$0xff] %v2361_v34  ;;  %v2355_v47 = vadd.f32 %v2320_v37, %v2291_v19  ;;  %v2363_v11 = vadd.f32 %v2340_v57, %v2299_v20 }
 0x95a   : > { %2370 = vst [vmem:[%s3524_s25 + $0x10] sm:$0xff] %v2354_v21  ;;  %2378 = vst [vmem:[%s3524_s25 + $0x50] sm:$0xff] %v2362_v53 }
 0x95b   : > { %2371 = vst [vmem:[%s3524_s25 + $0x18] sm:$0xff] %v2355_v47  ;;  %2379 = vst [vmem:[%s3524_s25 + $0x58] sm:$0xff] %v2363_v11  ;;  %v2259_v54 = vpop.f32.mrb[4].mxu0  ;;  %v2279_v8 = vpop.f32.mrb[4].mxu1 }
 0x95c   : > { %v2292_v46 = vadd.f32 %v2259_v54, %v4393_v63  ;;  %v2300_v7 = vadd.f32 %v2279_v8, %v4394_v32  ;;  %v2261_v24 = vpop.f32.mrb[5].mxu0  ;;  %v2281_v0 = vpop.f32.mrb[5].mxu1 }
 0x95d   : > { %v2293_v35 = vadd.f32 %v2261_v24, %v4395_v36  ;;  %v2301_v39 = vadd.f32 %v2281_v0, %v4396_v61  ;;  %v2263_v13 = vpop.f32.mrb[6].mxu0  ;;  %v2283_v50 = vpop.f32.mrb[6].mxu1 }
 0x95e   : > { %v2356_v18 = vadd.f32 %v2325_v3, %v2292_v46  ;;  %v2364_v15 = vadd.f32 %v2345_v22, %v2300_v7  ;;  %v2294_v43 = vadd.f32 %v2263_v13, %v4397_v58  ;;  %v2302_v49 = vadd.f32 %v2283_v50, %v4398_v55  ;;  %v2265_v31 = vpop.f32.mrb[7].mxu0  ;;  %v2285_v30 = vpop.f32.mrb[7].mxu1 }
 0x95f   : > { %v2357_v29 = vadd.f32 %v2325_v3, %v2293_v35  ;;  %v2365_v56 = vadd.f32 %v2345_v22, %v2301_v39  ;;  %v2295_v37 = vadd.f32 %v2265_v31, %v4399_v60  ;;  %v2303_v5 = vadd.f32 %v2285_v30, %v4400_v10 }
 0x960   : > { %2372 = vst [vmem:[%s3524_s25 + $0x20] sm:$0xff] %v2356_v18  ;;  %2380 = vst [vmem:[%s3524_s25 + $0x60] sm:$0xff] %v2364_v15  ;;  %v2358_v44 = vadd.f32 %v4162_v23, %v2294_v43  ;;  %v2366_v45 = vadd.f32 %v2350_v28, %v2302_v49 }
 0x961   : > { %2373 = vst [vmem:[%s3524_s25 + $0x28] sm:$0xff] %v2357_v29  ;;  %2381 = vst [vmem:[%s3524_s25 + $0x68] sm:$0xff] %v2365_v56  ;;  %v2359_v3 = vadd.f32 %v4162_v23, %v2295_v37  ;;  %v2367_v1 = vadd.f32 %v2350_v28, %v2303_v5 }
 0x962   : > { %2374 = vst [vmem:[%s3524_s25 + $0x30] sm:$0xff] %v2358_v44  ;;  %2382 = vst [vmem:[%s3524_s25 + $0x70] sm:$0xff] %v2366_v45 }
 0x963   : > { %2375 = vst [vmem:[%s3524_s25 + $0x38] sm:$0xff] %v2359_v3  ;;  %2383 = vst [vmem:[%s3524_s25 + $0x78] sm:$0xff] %v2367_v1 }
 0x964   : > { %2929 = shalt.err (!%p2926_p4)
}
 0x965   : > { %s2930_s22 = scalar_lea.hbm %s4196_s21, 2048  ;;  %s2934_s18 = scalar_lea.hbm %s4258_s8, 4096 }
 0x966   : > { %p2931_p7 = scmp.ne.s32.totalorder %s4196_s21, %s2930_s22  ;;  %p2935_p10 = scmp.lt.u32.totalorder %s4196_s21, %s4258_s8 }
 0x967   : > { %p2936_p11 = scmp.lt.u32.totalorder %s2934_s18, %s2930_s22  ;;  %p2938_p13 = scmp.lt.u32.totalorder %s2930_s22, %s4196_s21 }
 0x968   : > { %p2932_p8 = pnand %p2931_p7, %p3079_p5 }
 0x969   : > { %p2937_p12 = por %p2936_p11, %p2935_p10 }
 0x96a   : > { %p2933_p9 = pneg %p2932_p8 }
 0x96b   : > { %p2939_p0 = por %p2938_p13, %p2937_p12 }
 0x96d   : > { %p2940_p1 = pnand %p2939_p0, %p2933_p9 }
 0x96f   : > { %2943 = shalt.err (!%p2940_p1)
}
 0x970   : > { %s2994_s20 = smov 256   ;;  %s2995_s13 = smov 16  }
 0x971   : > { %2632 = dma.vmem_to_hbm [thread:$0]  (%p3079_p5), %s4198_s19, 2048, %s4196_s21, %s4209_s24, %s2994_s20, %s2994_s20, %s2995_s13  }
 0x972 PF: > { %p2638_p2 = scmp.ge.s32.totalorder %s2982_s30, 2  ;;  %s2413_s12 = sand.u32 1, %s2970_s27  }
 0x973   : > { %s2414_s17 = scalar_lea.sflag [#allocation5], %s2413_s12 }
 0x974   : > { %p2635_p3 = pnand %p2638_p2, %p3083_p6 }
 0x976   : > { %2965 = dma.done.wait (!%p2635_p3), %s2414_s17, 2048  }
 0x977   : > { %2967 = vsyncadd (!%p2635_p3), %s2414_s17, 4294965248  ;;  %p18_p4 = scmp.ge.s32.totalorder %s3066_s11, 4   ;;  %s4401_s27 = smov %s2974_s28 }
 0x978   : > { %s4402_s28 = smov %s2978_s29  ;;  %s4403_s29 = smov %s3077_s14 }
 0x979   : > { %s4404_s30 = smov %s3066_s11  ;;  %20 = sbr.rel (!%p18_p4) target bundleno = 3 (0x3), region = 109 }
 0x980   :  { %2419 = vsyncpa [#allocation5], 1 }
 0x981   :  { %2421 = vsyncpa [#allocation5 + $0x1], 1 }

</bundles_post_ra>
